<compile_context>
chip_gen: v7x
topology: tpu7x:2x2x1
jax: 0.10.0
libtpu: 0.0.40
codegen_flags: <defaults>
</compile_context>

<pallas_src>
import functools
import math

import jax
import jax.numpy as jnp
from jax.experimental import pallas as pl
from jax.experimental.pallas import tpu as pltpu

# On v6e/v7x, setting this to jnp.bfloat16 halves weight DMA bytes / VMEM footprint and
# uses the fast bf16 MXU path (accumulation stays f32 via preferred_element_type).
# Kept f32 here to match the f32 PyTorch reference numerics exactly.
MATMUL_DTYPE = jnp.float32

# Large finite negative additive mask bias (instead of -inf): exp() underflows to exactly
# 0.0 for masked keys, and a fully-masked query row degrades to a uniform softmax
# instead of NaN.
MASK_NEG = -1e30


def _layer_norm(x, gamma, beta, eps=1e-5):
    mean = jnp.mean(x, axis=-1, keepdims=True)
    var = jnp.mean((x - mean) ** 2, axis=-1, keepdims=True)
    return (x - mean) * jax.lax.rsqrt(var + eps) * gamma + beta


def _mm(a, b):
    return jnp.dot(a.astype(MATMUL_DTYPE), b.astype(MATMUL_DTYPE),
                   preferred_element_type=jnp.float32)


# ----------------------------------------------------------------------------
# Fused kernel: all encoder layers, whole batch block per grid step.
# grid = (num_batch_blocks, num_layers); layer axis is "arbitrary" (sequential carry).
# ----------------------------------------------------------------------------
def fused_encoder_kernel(num_heads, seq_len,
                         x_ref, maskb_ref,
                         wq_ref, wk_ref, wv_ref, wo_ref,
                         ln_g_ref, ln_b_ref,
                         w1_ref, b1_ref, w2_ref, b2_ref,
                         xout_ref, attw_ref,
                         x_carry):
    layer = pl.program_id(1)
    num_layers = pl.num_programs(1)

    R, E = x_carry.shape                 # R = batch_block * seq_len rows
    S = seq_len
    Bb = R // S
    H = num_heads
    D = E // H

    # Load the input activation into the VMEM carry only at the first layer; it then
    # stays resident in VMEM across the whole layer axis.
    @pl.when(layer == 0)
    def _():
        x_carry[...] = x_ref[...]

    x = x_carry[...]                     # (R, E) f32
    bias = maskb_ref[...]                # (Bb, 1, S): 0 for valid keys, MASK_NEG for pad

    gamma = ln_g_ref[0]                  # (1, E)
    beta = ln_b_ref[0]                   # (1, E)

    inv_sqrt_d = 1.0 / math.sqrt(D)

    # -------------------- multi-head self-attention --------------------
    attn = jnp.zeros((R, E), jnp.float32)
    p_heads = []
    for h in range(H):                   # static, unrolled (H is small)
        # Per-head weight slabs were pre-split host-side -> no in-kernel lane slicing.
        q = _mm(x, wq_ref[0, h])         # (R, D)
        k = _mm(x, wk_ref[0, h])         # (R, D)
        v = _mm(x, wv_ref[0, h])         # (R, D)

        q3 = q.reshape(Bb, S, D)         # leading-dim split only (layout no-op)
        k3 = k.reshape(Bb, S, D)
        v3 = v.reshape(Bb, S, D)

        # scores: (Bb, S, S), batched over the batch dim only.
        sc = jnp.einsum('bqd,bkd->bqk',
                        q3.astype(MATMUL_DTYPE), k3.astype(MATMUL_DTYPE),
                        preferred_element_type=jnp.float32) * inv_sqrt_d
        sc = sc + bias                   # padding-mask additive bias (broadcast over queries)

        # numerically-stable softmax; divide replaced by EUP reciprocal + VPU multiply.
        sc = sc - jnp.max(sc, axis=-1, keepdims=True)
        e = jnp.exp(sc)
        p = e * pl.reciprocal(jnp.sum(e, axis=-1, keepdims=True), approx=True)
        p_heads.append(p)                # post-softmax weights (dropout = identity, eval)

        o = jnp.einsum('bqk,bkd->bqd',
                       p.astype(MATMUL_DTYPE), v3.astype(MATMUL_DTYPE),
                       preferred_element_type=jnp.float32)      # (Bb, S, D)
        # Accumulate the output projection head-by-head: concat(o_h) @ wo == sum_h o_h @ wo_h
        attn = attn + _mm(o.reshape(R, D), wo_ref[0, h])         # (R, E)

    # Single, lane-wider attention-weight store per layer: (Bb, S, H*S).
    attw_ref[0] = jnp.concatenate(p_heads, axis=-1)

    # -------------------- residual + LayerNorm --------------------
    x1 = _layer_norm(attn + x, gamma, beta)

    # -------------------- position-wise feed-forward --------------------
    h1 = _mm(x1, w1_ref[0]) + b1_ref[0]
    h1 = jnp.maximum(h1, 0.0)            # ReLU
    y = _mm(h1, w2_ref[0]) + b2_ref[0]

    # residual + LayerNorm (reference reuses attn_layer_norm here -- reproduced).
    x2 = _layer_norm(y + x1, gamma, beta)

    # TODO(synk): torch's conditional NaN/Inf clamp is data-dependent control flow; with
    # the finite mask bias the outputs are always finite, so the clamp is an identity.

    x_carry[...] = x2                    # carry to the next layer (stays in VMEM)

    @pl.when(layer == num_layers - 1)
    def _():
        xout_ref[...] = x2               # written to HBM once per batch block


# ----------------------------------------------------------------------------
# Wrapper: one pallas_call for the whole encoder stack.
# ----------------------------------------------------------------------------
def encoder_stack_pallas(x, mask_bias, stacked, num_heads, batch_block=None):
    B, S, E = x.shape
    H = num_heads
    L, _, _, D = stacked["wq"].shape
    Hf = stacked["w1"].shape[2]

    # Whole batch per grid step (fills sublanes). For large B on v7x, use batch_block < B
    # so the parallel batch axis has >= 2 blocks and both TensorCores get work.
    Bb = B if batch_block is None else batch_block
    assert B % Bb == 0
    NB = B // Bb
    R = Bb * S

    x2d = x.reshape(B * S, E).astype(jnp.float32)

    kernel = functools.partial(fused_encoder_kernel, num_heads, S)

    def layer_spec(shape):
        nd = len(shape) - 1
        return pl.BlockSpec((1,) + tuple(shape[1:]),
                            lambda bi, l, _nd=nd: (l,) + (0,) * _nd)

    xout2d, attw_flat = pl.pallas_call(
        kernel,
        out_shape=(jax.ShapeDtypeStruct((B * S, E), jnp.float32),
                   jax.ShapeDtypeStruct((L, B, S, H * S), jnp.float32)),
        grid=(NB, L),
        in_specs=[
            pl.BlockSpec((R, E), lambda bi, l: (bi, 0)),          # x (resident across layers)
            pl.BlockSpec((Bb, 1, S), lambda bi, l: (bi, 0, 0)),   # additive padding-mask bias
            layer_spec(stacked["wq"].shape),                      # (L, H, E, D)
            layer_spec(stacked["wk"].shape),
            layer_spec(stacked["wv"].shape),
            layer_spec(stacked["wo"].shape),                      # (L, H, D, E)
            layer_spec(stacked["ln_g"].shape),                    # (L, 1, E)
            layer_spec(stacked["ln_b"].shape),
            layer_spec(stacked["w1"].shape),                      # (L, E, Hf)
            layer_spec(stacked["b1"].shape),                      # (L, 1, Hf)
            layer_spec(stacked["w2"].shape),                      # (L, Hf, E)
            layer_spec(stacked["b2"].shape),                      # (L, 1, E)
        ],
        out_specs=(
            # constant block index along the layer axis -> output stays resident in VMEM
            # and is written back to HBM once per batch block.
            pl.BlockSpec((R, E), lambda bi, l: (bi, 0)),
            pl.BlockSpec((1, Bb, S, H * S), lambda bi, l: (l, bi, 0, 0)),
        ),
        scratch_shapes=[pltpu.VMEM((R, E), jnp.float32)],         # activation carry
        compiler_params=pltpu.CompilerParams(
            dimension_semantics=("parallel", "arbitrary")),
    )(x2d, mask_bias,
      stacked["wq"], stacked["wk"], stacked["wv"], stacked["wo"],
      stacked["ln_g"], stacked["ln_b"],
      stacked["w1"], stacked["b1"], stacked["w2"], stacked["b2"])

    x_out = xout2d.reshape(B, S, E)
    # (L, B, S, H, S) -> (L, B, H, S, S): cheap host-side reshape/transpose of tiny data.
    attw = attw_flat.reshape(L, B, S, H, S).transpose(0, 1, 3, 2, 4)
    return x_out, attw


# ----------------------------------------------------------------------------
# Glue: embeddings, positional table, parameter stacking.
# ----------------------------------------------------------------------------
def sinusoidal_position_table(max_position, emb_dim):
    pos = jnp.arange(max_position, dtype=jnp.float32)[:, None]
    freq = jnp.power(10000.0, -jnp.arange(0, emb_dim, 2, dtype=jnp.float32) / emb_dim)
    pos_freq = pos * freq
    pe = jnp.zeros((max_position, emb_dim), jnp.float32)
    pe = pe.at[:, 0::2].set(jnp.sin(pos_freq))
    pe = pe.at[:, 1::2].set(jnp.cos(pos_freq))
    return pe


def stack_layer_params(layer_params, num_heads):
    """Stack per-layer params along a leading L axis and pre-split heads."""
    E = layer_params[0]["wq"].shape[0]
    H = num_heads
    D = E // H

    def qkv(name):
        # (E, E) -> (H, E, D) per layer (head-major column split), stacked over layers.
        return jnp.stack(
            [p[name].reshape(E, H, D).transpose(1, 0, 2) for p in layer_params], axis=0)

    return {
        "wq": qkv("wq"), "wk": qkv("wk"), "wv": qkv("wv"),                   # (L, H, E, D)
        "wo": jnp.stack([p["wo"].reshape(H, D, E) for p in layer_params], 0),  # (L, H, D, E)
        "ln_g": jnp.stack([p["ln_g"] for p in layer_params], 0),             # (L, 1, E)
        "ln_b": jnp.stack([p["ln_b"] for p in layer_params], 0),
        "w1": jnp.stack([p["w1"] for p in layer_params], 0),                 # (L, E, Hf)
        "b1": jnp.stack([p["b1"] for p in layer_params], 0),                 # (L, 1, Hf)
        "w2": jnp.stack([p["w2"] for p in layer_params], 0),                 # (L, Hf, E)
        "b2": jnp.stack([p["b2"] for p in layer_params], 0),                 # (L, 1, E)
    }


def encoder_forward(input_indices, padding_mask, emb_table, pe_table, layer_params, num_heads):
    B, S = input_indices.shape
    L = len(layer_params)

    inputs_embed = jnp.take(emb_table, input_indices, axis=0)   # (B, S, E)
    pos_embed = pe_table[:S]                                    # (S, E), broadcasts over batch
    x = (inputs_embed + pos_embed).astype(jnp.float32)
    # dropout: eval mode -> identity

    if padding_mask is None:
        mask_bias = jnp.zeros((B, 1, S), jnp.float32)
    else:
        mask_bias = jnp.where(padding_mask, MASK_NEG, 0.0).astype(jnp.float32).reshape(B, 1, S)

    stacked = stack_layer_params(layer_params, num_heads)
    x_out, attw = encoder_stack_pallas(x, mask_bias, stacked, num_heads)

    self_attn_weights = [attw[i] for i in range(L)]
    return x_out, self_attn_weights


# ----------------------------------------------------------------------------
# Deterministic parameter construction + run.
# ----------------------------------------------------------------------------
def init_params(key, num_layers, emb_dim, ffn_dim, num_voca):
    keys = jax.random.split(key, 1 + num_layers)
    emb_table = 0.02 * jax.random.normal(keys[0], (num_voca, emb_dim), jnp.float32)
    layer_params = []
    for l in range(num_layers):
        ks = jax.random.split(keys[1 + l], 8)
        scale = 0.05
        layer_params.append({
            "wq": scale * jax.random.normal(ks[0], (emb_dim, emb_dim), jnp.float32),
            "wk": scale * jax.random.normal(ks[1], (emb_dim, emb_dim), jnp.float32),
            "wv": scale * jax.random.normal(ks[2], (emb_dim, emb_dim), jnp.float32),
            "wo": scale * jax.random.normal(ks[3], (emb_dim, emb_dim), jnp.float32),
            "ln_g": jnp.ones((1, emb_dim), jnp.float32),
            "ln_b": jnp.zeros((1, emb_dim), jnp.float32),
            "w1": scale * jax.random.normal(ks[4], (emb_dim, ffn_dim), jnp.float32),
            "b1": 0.01 * jax.random.normal(ks[5], (1, ffn_dim), jnp.float32),
            "w2": scale * jax.random.normal(ks[6], (ffn_dim, emb_dim), jnp.float32),
            "b2": 0.01 * jax.random.normal(ks[7], (1, emb_dim), jnp.float32),
        })
    return emb_table, layer_params


if __name__ == "__main__":
    # config (small shapes consistent with the module)
    batch_size = 2
    src_len = 8
    emb_dim = 32
    num_heads = 4
    ffn_dim = 64
    num_encoder_layers = 2
    max_position = 16
    num_voca = 50

    key = jax.random.PRNGKey(0)
    k_param, k_tok = jax.random.split(key)

    emb_table, layer_params = init_params(k_param, num_encoder_layers, emb_dim, ffn_dim, num_voca)
    pe_table = sinusoidal_position_table(max_position, emb_dim)

    input_indices = jax.random.randint(k_tok, (batch_size, src_len), 0, num_voca, dtype=jnp.int32)
    # padding mask: True == padded token (masked out of attention); last position of batch 1 padded
    padding_mask = jnp.zeros((batch_size, src_len), dtype=bool).at[1, -1].set(True)

    x_out, attn_weights = encoder_forward(
        input_indices, padding_mask, emb_table, pe_table, layer_params, num_heads)

    x_out = jax.block_until_ready(x_out)
    attn_weights = [jax.block_until_ready(a) for a in attn_weights]

    assert x_out.shape == (batch_size, src_len, emb_dim)
    assert all(a.shape == (batch_size, num_heads, src_len, src_len) for a in attn_weights)
    assert bool(jnp.all(jnp.isfinite(x_out)))
    # masked key column gets zero attention weight in every layer
    assert bool(jnp.all(attn_weights[0][1, :, :, -1] == 0.0))
    assert bool(jnp.all(attn_weights[1][1, :, :, -1] == 0.0))
    # attention rows sum to ~1 (approx reciprocal in softmax)
    row_sums = jnp.sum(attn_weights[0], axis=-1)
    assert bool(jnp.all(jnp.abs(row_sums - 1.0) < 1e-2))

    print("KERNEL_OK")
</pallas_src>

<mosaic_0001>
module attributes {stable_mosaic.version = 11 : i64} {
  func.func @fused_encoder_kernel(%arg0: i32, %arg1: i32, %arg2: memref<16x32xf32, #tpu.memory_space<vmem>>, %arg3: memref<2x1x8xf32, #tpu.memory_space<vmem>>, %arg4: memref<1x4x32x8xf32, #tpu.memory_space<vmem>>, %arg5: memref<1x4x32x8xf32, #tpu.memory_space<vmem>>, %arg6: memref<1x4x32x8xf32, #tpu.memory_space<vmem>>, %arg7: memref<1x4x8x32xf32, #tpu.memory_space<vmem>>, %arg8: memref<1x1x32xf32, #tpu.memory_space<vmem>>, %arg9: memref<1x1x32xf32, #tpu.memory_space<vmem>>, %arg10: memref<1x32x64xf32, #tpu.memory_space<vmem>>, %arg11: memref<1x1x64xf32, #tpu.memory_space<vmem>>, %arg12: memref<1x64x32xf32, #tpu.memory_space<vmem>>, %arg13: memref<1x1x32xf32, #tpu.memory_space<vmem>>, %arg14: memref<16x32xf32, #tpu.memory_space<vmem>>, %arg15: memref<1x2x8x32xf32, #tpu.memory_space<vmem>>, %arg16: memref<16x32xf32, #tpu.memory_space<vmem>>) attributes {dimension_semantics = [#tpu.dimension_semantics<parallel>, #tpu.dimension_semantics<arbitrary>], iteration_bounds = array<i64: 1, 2>, scalar_prefetch = 0 : i64, scratch_operands = 1 : i64, tpu.core_type = #tpu.core_type<tc>, window_params = [{transform_indices = @transform_0, window_bounds = array<i64: 16, 32>}, {transform_indices = @transform_1, window_bounds = array<i64: 2, 1, 8>}, {transform_indices = @transform_2, window_bounds = array<i64: 1, 4, 32, 8>}, {transform_indices = @transform_3, window_bounds = array<i64: 1, 4, 32, 8>}, {transform_indices = @transform_4, window_bounds = array<i64: 1, 4, 32, 8>}, {transform_indices = @transform_5, window_bounds = array<i64: 1, 4, 8, 32>}, {transform_indices = @transform_6, window_bounds = array<i64: 1, 1, 32>}, {transform_indices = @transform_7, window_bounds = array<i64: 1, 1, 32>}, {transform_indices = @transform_8, window_bounds = array<i64: 1, 32, 64>}, {transform_indices = @transform_9, window_bounds = array<i64: 1, 1, 64>}, {transform_indices = @transform_10, window_bounds = array<i64: 1, 64, 32>}, {transform_indices = @transform_11, window_bounds = array<i64: 1, 1, 32>}, {transform_indices = @transform_12, window_bounds = array<i64: 16, 32>}, {transform_indices = @transform_13, window_bounds = array<i64: 1, 2, 8, 32>}]} {
    %c0_i32 = arith.constant 0 : i32
    %0 = arith.cmpi eq, %arg1, %c0_i32 : i32
    %1 = arith.extui %0 : i1 to i32
    %c0_i32_0 = arith.constant 0 : i32
    %2 = arith.cmpi ne, %1, %c0_i32_0 : i32
    scf.if %2 {
      %c0_140 = arith.constant 0 : index
      %c0_141 = arith.constant 0 : index
      %212 = vector.load %arg2[%c0_140, %c0_141] : memref<16x32xf32, #tpu.memory_space<vmem>>, vector<16x32xf32>
      %c0_142 = arith.constant 0 : index
      %c0_143 = arith.constant 0 : index
      %213 = vector.load %arg16[%c0_142, %c0_143] : memref<16x32xf32, #tpu.memory_space<vmem>>, vector<16x32xf32>
      tpu.vector_store %arg16[%c0_142, %c0_143], %212 {strides = array<i32>} : memref<16x32xf32, #tpu.memory_space<vmem>>, vector<16x32xf32>,
    } else {
    }
    %c0 = arith.constant 0 : index
    %c0_1 = arith.constant 0 : index
    %3 = vector.load %arg16[%c0, %c0_1] : memref<16x32xf32, #tpu.memory_space<vmem>>, vector<16x32xf32>
    %c0_2 = arith.constant 0 : index
    %c0_3 = arith.constant 0 : index
    %c0_4 = arith.constant 0 : index
    %4 = vector.load %arg3[%c0_2, %c0_3, %c0_4] : memref<2x1x8xf32, #tpu.memory_space<vmem>>, vector<2x1x8xf32>
    %c0_5 = arith.constant 0 : index
    %c0_6 = arith.constant 0 : index
    %c0_7 = arith.constant 0 : index
    %5 = vector.load %arg8[%c0_5, %c0_6, %c0_7] : memref<1x1x32xf32, #tpu.memory_space<vmem>>, vector<1x1x32xf32>
    %6 = vector.shape_cast %5 : vector<1x1x32xf32> to vector<1x32xf32>
    %c0_8 = arith.constant 0 : index
    %c0_9 = arith.constant 0 : index
    %c0_10 = arith.constant 0 : index
    %7 = vector.load %arg9[%c0_8, %c0_9, %c0_10] : memref<1x1x32xf32, #tpu.memory_space<vmem>>, vector<1x1x32xf32>
    %8 = vector.shape_cast %7 : vector<1x1x32xf32> to vector<1x32xf32>
    %cst = arith.constant 0.000000e+00 : f32
    %9 = vector.broadcast %cst : f32 to vector<16x32xf32>
    %c0_11 = arith.constant 0 : index
    %c0_12 = arith.constant 0 : index
    %c0_13 = arith.constant 0 : index
    %c0_14 = arith.constant 0 : index
    %10 = vector.load %arg4[%c0_11, %c0_12, %c0_13, %c0_14] : memref<1x4x32x8xf32, #tpu.memory_space<vmem>>, vector<1x1x32x8xf32>
    %11 = vector.shape_cast %10 : vector<1x1x32x8xf32> to vector<32x8xf32>
    %cst_15 = arith.constant dense<0.000000e+00> : vector<16x8xf32>
    %12 = tpu.matmul %3, %11, %cst_15 {dimension_numbers = #tpu.dot_dimension_numbers<[1], [0], [0], [1], [0, 0, 1, 1], [], []>} : vector<16x32xf32>, vector<32x8xf32>, vector<16x8xf32> -> vector<16x8xf32>
    %c0_16 = arith.constant 0 : index
    %c0_17 = arith.constant 0 : index
    %c0_18 = arith.constant 0 : index
    %c0_19 = arith.constant 0 : index
    %13 = vector.load %arg5[%c0_16, %c0_17, %c0_18, %c0_19] : memref<1x4x32x8xf32, #tpu.memory_space<vmem>>, vector<1x1x32x8xf32>
    %14 = vector.shape_cast %13 : vector<1x1x32x8xf32> to vector<32x8xf32>
    %cst_20 = arith.constant dense<0.000000e+00> : vector<16x8xf32>
    %15 = tpu.matmul %3, %14, %cst_20 {dimension_numbers = #tpu.dot_dimension_numbers<[1], [0], [0], [1], [0, 0, 1, 1], [], []>} : vector<16x32xf32>, vector<32x8xf32>, vector<16x8xf32> -> vector<16x8xf32>
    %c0_21 = arith.constant 0 : index
    %c0_22 = arith.constant 0 : index
    %c0_23 = arith.constant 0 : index
    %c0_24 = arith.constant 0 : index
    %16 = vector.load %arg6[%c0_21, %c0_22, %c0_23, %c0_24] : memref<1x4x32x8xf32, #tpu.memory_space<vmem>>, vector<1x1x32x8xf32>
    %17 = vector.shape_cast %16 : vector<1x1x32x8xf32> to vector<32x8xf32>
    %cst_25 = arith.constant dense<0.000000e+00> : vector<16x8xf32>
    %18 = tpu.matmul %3, %17, %cst_25 {dimension_numbers = #tpu.dot_dimension_numbers<[1], [0], [0], [1], [0, 0, 1, 1], [], []>} : vector<16x32xf32>, vector<32x8xf32>, vector<16x8xf32> -> vector<16x8xf32>
    %19 = vector.shape_cast %12 : vector<16x8xf32> to vector<2x8x8xf32>
    %20 = vector.shape_cast %15 : vector<16x8xf32> to vector<2x8x8xf32>
    %21 = vector.shape_cast %18 : vector<16x8xf32> to vector<2x8x8xf32>
    "tpu.trace_start"() <{level = 10 : i32, message = "bqd,bkd->bqk"}> : () -> ()
    %cst_26 = arith.constant dense<0.000000e+00> : vector<2x8x8xf32>
    %22 = tpu.matmul %19, %20, %cst_26 {dimension_numbers = #tpu.dot_dimension_numbers<[2], [2], [1], [1], [0, 0, 0, 1, 1, 1], [0], [0]>} : vector<2x8x8xf32>, vector<2x8x8xf32>, vector<2x8x8xf32> -> vector<2x8x8xf32>
    "tpu.trace_stop"() : () -> ()
    %cst_27 = arith.constant 0.353553385 : f32
    %23 = vector.broadcast %cst_27 : f32 to vector<2x8x8xf32>
    %24 = arith.mulf %22, %23 : vector<2x8x8xf32>
    %25 = vector.broadcast %4 : vector<2x1x8xf32> to vector<2x8x8xf32>
    %26 = arith.addf %24, %25 : vector<2x8x8xf32>
    %cst_28 = arith.constant dense<0xFF800000> : vector<2x8xf32>
    %27 = vector.multi_reduction <maximumf>, %26, %cst_28 [2] : vector<2x8x8xf32> to vector<2x8xf32>
    %28 = vector.shape_cast %27 : vector<2x8xf32> to vector<2x8x1xf32>
    %29 = vector.broadcast %28 : vector<2x8x1xf32> to vector<2x8x8xf32>
    %30 = arith.subf %26, %29 : vector<2x8x8xf32>
    %31 = math.exp %30 : vector<2x8x8xf32>
    %cst_29 = arith.constant dense<0.000000e+00> : vector<2x8xf32>
    %32 = vector.multi_reduction <add>, %31, %cst_29 [2] : vector<2x8x8xf32> to vector<2x8xf32>
    %33 = vector.shape_cast %32 : vector<2x8xf32> to vector<2x8x1xf32>
    %34 = tpu.reciprocal %33 {approx = true} : vector<2x8x1xf32> -> vector<2x8x1xf32>
    %35 = vector.broadcast %34 : vector<2x8x1xf32> to vector<2x8x8xf32>
    %36 = arith.mulf %31, %35 : vector<2x8x8xf32>
    "tpu.trace_start"() <{level = 10 : i32, message = "bqk,bkd->bqd"}> : () -> ()
    %cst_30 = arith.constant dense<0.000000e+00> : vector<2x8x8xf32>
    %37 = tpu.matmul %36, %21, %cst_30 {dimension_numbers = #tpu.dot_dimension_numbers<[2], [1], [1], [2], [0, 0, 0, 1, 1, 2], [0], [0]>} : vector<2x8x8xf32>, vector<2x8x8xf32>, vector<2x8x8xf32> -> vector<2x8x8xf32>
    "tpu.trace_stop"() : () -> ()
    %38 = vector.shape_cast %37 : vector<2x8x8xf32> to vector<16x8xf32>
    %c0_31 = arith.constant 0 : index
    %c0_32 = arith.constant 0 : index
    %c0_33 = arith.constant 0 : index
    %c0_34 = arith.constant 0 : index
    %39 = vector.load %arg7[%c0_31, %c0_32, %c0_33, %c0_34] : memref<1x4x8x32xf32, #tpu.memory_space<vmem>>, vector<1x1x8x32xf32>
    %40 = vector.shape_cast %39 : vector<1x1x8x32xf32> to vector<8x32xf32>
    %cst_35 = arith.constant dense<0.000000e+00> : vector<16x32xf32>
    %41 = tpu.matmul %38, %40, %cst_35 {dimension_numbers = #tpu.dot_dimension_numbers<[1], [0], [0], [1], [0, 0, 1, 1], [], []>} : vector<16x8xf32>, vector<8x32xf32>, vector<16x32xf32> -> vector<16x32xf32>
    %42 = arith.addf %9, %41 : vector<16x32xf32>
    %c0_36 = arith.constant 0 : index
    %c1 = arith.constant 1 : index
    %c0_37 = arith.constant 0 : index
    %c0_38 = arith.constant 0 : index
    %43 = vector.load %arg4[%c0_36, %c1, %c0_37, %c0_38] : memref<1x4x32x8xf32, #tpu.memory_space<vmem>>, vector<1x1x32x8xf32>
    %44 = vector.shape_cast %43 : vector<1x1x32x8xf32> to vector<32x8xf32>
    %cst_39 = arith.constant dense<0.000000e+00> : vector<16x8xf32>
    %45 = tpu.matmul %3, %44, %cst_39 {dimension_numbers = #tpu.dot_dimension_numbers<[1], [0], [0], [1], [0, 0, 1, 1], [], []>} : vector<16x32xf32>, vector<32x8xf32>, vector<16x8xf32> -> vector<16x8xf32>
    %c0_40 = arith.constant 0 : index
    %c1_41 = arith.constant 1 : index
    %c0_42 = arith.constant 0 : index
    %c0_43 = arith.constant 0 : index
    %46 = vector.load %arg5[%c0_40, %c1_41, %c0_42, %c0_43] : memref<1x4x32x8xf32, #tpu.memory_space<vmem>>, vector<1x1x32x8xf32>
    %47 = vector.shape_cast %46 : vector<1x1x32x8xf32> to vector<32x8xf32>
    %cst_44 = arith.constant dense<0.000000e+00> : vector<16x8xf32>
    %48 = tpu.matmul %3, %47, %cst_44 {dimension_numbers = #tpu.dot_dimension_numbers<[1], [0], [0], [1], [0, 0, 1, 1], [], []>} : vector<16x32xf32>, vector<32x8xf32>, vector<16x8xf32> -> vector<16x8xf32>
    %c0_45 = arith.constant 0 : index
    %c1_46 = arith.constant 1 : index
    %c0_47 = arith.constant 0 : index
    %c0_48 = arith.constant 0 : index
    %49 = vector.load %arg6[%c0_45, %c1_46, %c0_47, %c0_48] : memref<1x4x32x8xf32, #tpu.memory_space<vmem>>, vector<1x1x32x8xf32>
    %50 = vector.shape_cast %49 : vector<1x1x32x8xf32> to vector<32x8xf32>
    %cst_49 = arith.constant dense<0.000000e+00> : vector<16x8xf32>
    %51 = tpu.matmul %3, %50, %cst_49 {dimension_numbers = #tpu.dot_dimension_numbers<[1], [0], [0], [1], [0, 0, 1, 1], [], []>} : vector<16x32xf32>, vector<32x8xf32>, vector<16x8xf32> -> vector<16x8xf32>
    %52 = vector.shape_cast %45 : vector<16x8xf32> to vector<2x8x8xf32>
    %53 = vector.shape_cast %48 : vector<16x8xf32> to vector<2x8x8xf32>
    %54 = vector.shape_cast %51 : vector<16x8xf32> to vector<2x8x8xf32>
    "tpu.trace_start"() <{level = 10 : i32, message = "bqd,bkd->bqk"}> : () -> ()
    %cst_50 = arith.constant dense<0.000000e+00> : vector<2x8x8xf32>
    %55 = tpu.matmul %52, %53, %cst_50 {dimension_numbers = #tpu.dot_dimension_numbers<[2], [2], [1], [1], [0, 0, 0, 1, 1, 1], [0], [0]>} : vector<2x8x8xf32>, vector<2x8x8xf32>, vector<2x8x8xf32> -> vector<2x8x8xf32>
    "tpu.trace_stop"() : () -> ()
    %cst_51 = arith.constant 0.353553385 : f32
    %56 = vector.broadcast %cst_51 : f32 to vector<2x8x8xf32>
    %57 = arith.mulf %55, %56 : vector<2x8x8xf32>
    %58 = vector.broadcast %4 : vector<2x1x8xf32> to vector<2x8x8xf32>
    %59 = arith.addf %57, %58 : vector<2x8x8xf32>
    %cst_52 = arith.constant dense<0xFF800000> : vector<2x8xf32>
    %60 = vector.multi_reduction <maximumf>, %59, %cst_52 [2] : vector<2x8x8xf32> to vector<2x8xf32>
    %61 = vector.shape_cast %60 : vector<2x8xf32> to vector<2x8x1xf32>
    %62 = vector.broadcast %61 : vector<2x8x1xf32> to vector<2x8x8xf32>
    %63 = arith.subf %59, %62 : vector<2x8x8xf32>
    %64 = math.exp %63 : vector<2x8x8xf32>
    %cst_53 = arith.constant dense<0.000000e+00> : vector<2x8xf32>
    %65 = vector.multi_reduction <add>, %64, %cst_53 [2] : vector<2x8x8xf32> to vector<2x8xf32>
    %66 = vector.shape_cast %65 : vector<2x8xf32> to vector<2x8x1xf32>
    %67 = tpu.reciprocal %66 {approx = true} : vector<2x8x1xf32> -> vector<2x8x1xf32>
    %68 = vector.broadcast %67 : vector<2x8x1xf32> to vector<2x8x8xf32>
    %69 = arith.mulf %64, %68 : vector<2x8x8xf32>
    "tpu.trace_start"() <{level = 10 : i32, message = "bqk,bkd->bqd"}> : () -> ()
    %cst_54 = arith.constant dense<0.000000e+00> : vector<2x8x8xf32>
    %70 = tpu.matmul %69, %54, %cst_54 {dimension_numbers = #tpu.dot_dimension_numbers<[2], [1], [1], [2], [0, 0, 0, 1, 1, 2], [0], [0]>} : vector<2x8x8xf32>, vector<2x8x8xf32>, vector<2x8x8xf32> -> vector<2x8x8xf32>
    "tpu.trace_stop"() : () -> ()
    %71 = vector.shape_cast %70 : vector<2x8x8xf32> to vector<16x8xf32>
    %c0_55 = arith.constant 0 : index
    %c1_56 = arith.constant 1 : index
    %c0_57 = arith.constant 0 : index
    %c0_58 = arith.constant 0 : index
    %72 = vector.load %arg7[%c0_55, %c1_56, %c0_57, %c0_58] : memref<1x4x8x32xf32, #tpu.memory_space<vmem>>, vector<1x1x8x32xf32>
    %73 = vector.shape_cast %72 : vector<1x1x8x32xf32> to vector<8x32xf32>
    %cst_59 = arith.constant dense<0.000000e+00> : vector<16x32xf32>
    %74 = tpu.matmul %71, %73, %cst_59 {dimension_numbers = #tpu.dot_dimension_numbers<[1], [0], [0], [1], [0, 0, 1, 1], [], []>} : vector<16x8xf32>, vector<8x32xf32>, vector<16x32xf32> -> vector<16x32xf32>
    %75 = arith.addf %42, %74 : vector<16x32xf32>
    %c0_60 = arith.constant 0 : index
    %c2 = arith.constant 2 : index
    %c0_61 = arith.constant 0 : index
    %c0_62 = arith.constant 0 : index
    %76 = vector.load %arg4[%c0_60, %c2, %c0_61, %c0_62] : memref<1x4x32x8xf32, #tpu.memory_space<vmem>>, vector<1x1x32x8xf32>
    %77 = vector.shape_cast %76 : vector<1x1x32x8xf32> to vector<32x8xf32>
    %cst_63 = arith.constant dense<0.000000e+00> : vector<16x8xf32>
    %78 = tpu.matmul %3, %77, %cst_63 {dimension_numbers = #tpu.dot_dimension_numbers<[1], [0], [0], [1], [0, 0, 1, 1], [], []>} : vector<16x32xf32>, vector<32x8xf32>, vector<16x8xf32> -> vector<16x8xf32>
    %c0_64 = arith.constant 0 : index
    %c2_65 = arith.constant 2 : index
    %c0_66 = arith.constant 0 : index
    %c0_67 = arith.constant 0 : index
    %79 = vector.load %arg5[%c0_64, %c2_65, %c0_66, %c0_67] : memref<1x4x32x8xf32, #tpu.memory_space<vmem>>, vector<1x1x32x8xf32>
    %80 = vector.shape_cast %79 : vector<1x1x32x8xf32> to vector<32x8xf32>
    %cst_68 = arith.constant dense<0.000000e+00> : vector<16x8xf32>
    %81 = tpu.matmul %3, %80, %cst_68 {dimension_numbers = #tpu.dot_dimension_numbers<[1], [0], [0], [1], [0, 0, 1, 1], [], []>} : vector<16x32xf32>, vector<32x8xf32>, vector<16x8xf32> -> vector<16x8xf32>
    %c0_69 = arith.constant 0 : index
    %c2_70 = arith.constant 2 : index
    %c0_71 = arith.constant 0 : index
    %c0_72 = arith.constant 0 : index
    %82 = vector.load %arg6[%c0_69, %c2_70, %c0_71, %c0_72] : memref<1x4x32x8xf32, #tpu.memory_space<vmem>>, vector<1x1x32x8xf32>
    %83 = vector.shape_cast %82 : vector<1x1x32x8xf32> to vector<32x8xf32>
    %cst_73 = arith.constant dense<0.000000e+00> : vector<16x8xf32>
    %84 = tpu.matmul %3, %83, %cst_73 {dimension_numbers = #tpu.dot_dimension_numbers<[1], [0], [0], [1], [0, 0, 1, 1], [], []>} : vector<16x32xf32>, vector<32x8xf32>, vector<16x8xf32> -> vector<16x8xf32>
    %85 = vector.shape_cast %78 : vector<16x8xf32> to vector<2x8x8xf32>
    %86 = vector.shape_cast %81 : vector<16x8xf32> to vector<2x8x8xf32>
    %87 = vector.shape_cast %84 : vector<16x8xf32> to vector<2x8x8xf32>
    "tpu.trace_start"() <{level = 10 : i32, message = "bqd,bkd->bqk"}> : () -> ()
    %cst_74 = arith.constant dense<0.000000e+00> : vector<2x8x8xf32>
    %88 = tpu.matmul %85, %86, %cst_74 {dimension_numbers = #tpu.dot_dimension_numbers<[2], [2], [1], [1], [0, 0, 0, 1, 1, 1], [0], [0]>} : vector<2x8x8xf32>, vector<2x8x8xf32>, vector<2x8x8xf32> -> vector<2x8x8xf32>
    "tpu.trace_stop"() : () -> ()
    %cst_75 = arith.constant 0.353553385 : f32
    %89 = vector.broadcast %cst_75 : f32 to vector<2x8x8xf32>
    %90 = arith.mulf %88, %89 : vector<2x8x8xf32>
    %91 = vector.broadcast %4 : vector<2x1x8xf32> to vector<2x8x8xf32>
    %92 = arith.addf %90, %91 : vector<2x8x8xf32>
    %cst_76 = arith.constant dense<0xFF800000> : vector<2x8xf32>
    %93 = vector.multi_reduction <maximumf>, %92, %cst_76 [2] : vector<2x8x8xf32> to vector<2x8xf32>
    %94 = vector.shape_cast %93 : vector<2x8xf32> to vector<2x8x1xf32>
    %95 = vector.broadcast %94 : vector<2x8x1xf32> to vector<2x8x8xf32>
    %96 = arith.subf %92, %95 : vector<2x8x8xf32>
    %97 = math.exp %96 : vector<2x8x8xf32>
    %cst_77 = arith.constant dense<0.000000e+00> : vector<2x8xf32>
    %98 = vector.multi_reduction <add>, %97, %cst_77 [2] : vector<2x8x8xf32> to vector<2x8xf32>
    %99 = vector.shape_cast %98 : vector<2x8xf32> to vector<2x8x1xf32>
    %100 = tpu.reciprocal %99 {approx = true} : vector<2x8x1xf32> -> vector<2x8x1xf32>
    %101 = vector.broadcast %100 : vector<2x8x1xf32> to vector<2x8x8xf32>
    %102 = arith.mulf %97, %101 : vector<2x8x8xf32>
    "tpu.trace_start"() <{level = 10 : i32, message = "bqk,bkd->bqd"}> : () -> ()
    %cst_78 = arith.constant dense<0.000000e+00> : vector<2x8x8xf32>
    %103 = tpu.matmul %102, %87, %cst_78 {dimension_numbers = #tpu.dot_dimension_numbers<[2], [1], [1], [2], [0, 0, 0, 1, 1, 2], [0], [0]>} : vector<2x8x8xf32>, vector<2x8x8xf32>, vector<2x8x8xf32> -> vector<2x8x8xf32>
    "tpu.trace_stop"() : () -> ()
    %104 = vector.shape_cast %103 : vector<2x8x8xf32> to vector<16x8xf32>
    %c0_79 = arith.constant 0 : index
    %c2_80 = arith.constant 2 : index
    %c0_81 = arith.constant 0 : index
    %c0_82 = arith.constant 0 : index
    %105 = vector.load %arg7[%c0_79, %c2_80, %c0_81, %c0_82] : memref<1x4x8x32xf32, #tpu.memory_space<vmem>>, vector<1x1x8x32xf32>
    %106 = vector.shape_cast %105 : vector<1x1x8x32xf32> to vector<8x32xf32>
    %cst_83 = arith.constant dense<0.000000e+00> : vector<16x32xf32>
    %107 = tpu.matmul %104, %106, %cst_83 {dimension_numbers = #tpu.dot_dimension_numbers<[1], [0], [0], [1], [0, 0, 1, 1], [], []>} : vector<16x8xf32>, vector<8x32xf32>, vector<16x32xf32> -> vector<16x32xf32>
    %108 = arith.addf %75, %107 : vector<16x32xf32>
    %c0_84 = arith.constant 0 : index
    %c3 = arith.constant 3 : index
    %c0_85 = arith.constant 0 : index
    %c0_86 = arith.constant 0 : index
    %109 = vector.load %arg4[%c0_84, %c3, %c0_85, %c0_86] : memref<1x4x32x8xf32, #tpu.memory_space<vmem>>, vector<1x1x32x8xf32>
    %110 = vector.shape_cast %109 : vector<1x1x32x8xf32> to vector<32x8xf32>
    %cst_87 = arith.constant dense<0.000000e+00> : vector<16x8xf32>
    %111 = tpu.matmul %3, %110, %cst_87 {dimension_numbers = #tpu.dot_dimension_numbers<[1], [0], [0], [1], [0, 0, 1, 1], [], []>} : vector<16x32xf32>, vector<32x8xf32>, vector<16x8xf32> -> vector<16x8xf32>
    %c0_88 = arith.constant 0 : index
    %c3_89 = arith.constant 3 : index
    %c0_90 = arith.constant 0 : index
    %c0_91 = arith.constant 0 : index
    %112 = vector.load %arg5[%c0_88, %c3_89, %c0_90, %c0_91] : memref<1x4x32x8xf32, #tpu.memory_space<vmem>>, vector<1x1x32x8xf32>
    %113 = vector.shape_cast %112 : vector<1x1x32x8xf32> to vector<32x8xf32>
    %cst_92 = arith.constant dense<0.000000e+00> : vector<16x8xf32>
    %114 = tpu.matmul %3, %113, %cst_92 {dimension_numbers = #tpu.dot_dimension_numbers<[1], [0], [0], [1], [0, 0, 1, 1], [], []>} : vector<16x32xf32>, vector<32x8xf32>, vector<16x8xf32> -> vector<16x8xf32>
    %c0_93 = arith.constant 0 : index
    %c3_94 = arith.constant 3 : index
    %c0_95 = arith.constant 0 : index
    %c0_96 = arith.constant 0 : index
    %115 = vector.load %arg6[%c0_93, %c3_94, %c0_95, %c0_96] : memref<1x4x32x8xf32, #tpu.memory_space<vmem>>, vector<1x1x32x8xf32>
    %116 = vector.shape_cast %115 : vector<1x1x32x8xf32> to vector<32x8xf32>
    %cst_97 = arith.constant dense<0.000000e+00> : vector<16x8xf32>
    %117 = tpu.matmul %3, %116, %cst_97 {dimension_numbers = #tpu.dot_dimension_numbers<[1], [0], [0], [1], [0, 0, 1, 1], [], []>} : vector<16x32xf32>, vector<32x8xf32>, vector<16x8xf32> -> vector<16x8xf32>
    %118 = vector.shape_cast %111 : vector<16x8xf32> to vector<2x8x8xf32>
    %119 = vector.shape_cast %114 : vector<16x8xf32> to vector<2x8x8xf32>
    %120 = vector.shape_cast %117 : vector<16x8xf32> to vector<2x8x8xf32>
    "tpu.trace_start"() <{level = 10 : i32, message = "bqd,bkd->bqk"}> : () -> ()
    %cst_98 = arith.constant dense<0.000000e+00> : vector<2x8x8xf32>
    %121 = tpu.matmul %118, %119, %cst_98 {dimension_numbers = #tpu.dot_dimension_numbers<[2], [2], [1], [1], [0, 0, 0, 1, 1, 1], [0], [0]>} : vector<2x8x8xf32>, vector<2x8x8xf32>, vector<2x8x8xf32> -> vector<2x8x8xf32>
    "tpu.trace_stop"() : () -> ()
    %cst_99 = arith.constant 0.353553385 : f32
    %122 = vector.broadcast %cst_99 : f32 to vector<2x8x8xf32>
    %123 = arith.mulf %121, %122 : vector<2x8x8xf32>
    %124 = vector.broadcast %4 : vector<2x1x8xf32> to vector<2x8x8xf32>
    %125 = arith.addf %123, %124 : vector<2x8x8xf32>
    %cst_100 = arith.constant dense<0xFF800000> : vector<2x8xf32>
    %126 = vector.multi_reduction <maximumf>, %125, %cst_100 [2] : vector<2x8x8xf32> to vector<2x8xf32>
    %127 = vector.shape_cast %126 : vector<2x8xf32> to vector<2x8x1xf32>
    %128 = vector.broadcast %127 : vector<2x8x1xf32> to vector<2x8x8xf32>
    %129 = arith.subf %125, %128 : vector<2x8x8xf32>
    %130 = math.exp %129 : vector<2x8x8xf32>
    %cst_101 = arith.constant dense<0.000000e+00> : vector<2x8xf32>
    %131 = vector.multi_reduction <add>, %130, %cst_101 [2] : vector<2x8x8xf32> to vector<2x8xf32>
    %132 = vector.shape_cast %131 : vector<2x8xf32> to vector<2x8x1xf32>
    %133 = tpu.reciprocal %132 {approx = true} : vector<2x8x1xf32> -> vector<2x8x1xf32>
    %134 = vector.broadcast %133 : vector<2x8x1xf32> to vector<2x8x8xf32>
    %135 = arith.mulf %130, %134 : vector<2x8x8xf32>
    "tpu.trace_start"() <{level = 10 : i32, message = "bqk,bkd->bqd"}> : () -> ()
    %cst_102 = arith.constant dense<0.000000e+00> : vector<2x8x8xf32>
    %136 = tpu.matmul %135, %120, %cst_102 {dimension_numbers = #tpu.dot_dimension_numbers<[2], [1], [1], [2], [0, 0, 0, 1, 1, 2], [0], [0]>} : vector<2x8x8xf32>, vector<2x8x8xf32>, vector<2x8x8xf32> -> vector<2x8x8xf32>
    "tpu.trace_stop"() : () -> ()
    %137 = vector.shape_cast %136 : vector<2x8x8xf32> to vector<16x8xf32>
    %c0_103 = arith.constant 0 : index
    %c3_104 = arith.constant 3 : index
    %c0_105 = arith.constant 0 : index
    %c0_106 = arith.constant 0 : index
    %138 = vector.load %arg7[%c0_103, %c3_104, %c0_105, %c0_106] : memref<1x4x8x32xf32, #tpu.memory_space<vmem>>, vector<1x1x8x32xf32>
    %139 = vector.shape_cast %138 : vector<1x1x8x32xf32> to vector<8x32xf32>
    %cst_107 = arith.constant dense<0.000000e+00> : vector<16x32xf32>
    %140 = tpu.matmul %137, %139, %cst_107 {dimension_numbers = #tpu.dot_dimension_numbers<[1], [0], [0], [1], [0, 0, 1, 1], [], []>} : vector<16x8xf32>, vector<8x32xf32>, vector<16x32xf32> -> vector<16x32xf32>
    %141 = arith.addf %108, %140 : vector<16x32xf32>
    %142 = tpu.concatenate %36, %69, %102, %135 in 2 : vector<2x8x8xf32>, vector<2x8x8xf32>, vector<2x8x8xf32>, vector<2x8x8xf32> -> vector<2x8x32xf32>
    %c0_108 = arith.constant 0 : index
    %c0_109 = arith.constant 0 : index
    %c0_110 = arith.constant 0 : index
    %c0_111 = arith.constant 0 : index
    %143 = vector.load %arg15[%c0_108, %c0_109, %c0_110, %c0_111] : memref<1x2x8x32xf32, #tpu.memory_space<vmem>>, vector<1x2x8x32xf32>
    %144 = vector.shape_cast %143 : vector<1x2x8x32xf32> to vector<2x8x32xf32>
    %145 = vector.shape_cast %142 : vector<2x8x32xf32> to vector<1x2x8x32xf32>
    tpu.vector_store %arg15[%c0_108, %c0_109, %c0_110, %c0_111], %145 {strides = array<i32>} : memref<1x2x8x32xf32, #tpu.memory_space<vmem>>, vector<1x2x8x32xf32>,
    %146 = arith.addf %141, %3 : vector<16x32xf32>
    %cst_112 = arith.constant dense<0.000000e+00> : vector<16xf32>
    %147 = vector.multi_reduction <add>, %146, %cst_112 [1] : vector<16x32xf32> to vector<16xf32>
    %148 = vector.shape_cast %147 : vector<16xf32> to vector<16x1xf32>
    %cst_113 = arith.constant 3.200000e+01 : f32
    %149 = vector.broadcast %cst_113 : f32 to vector<16x1xf32>
    %150 = arith.divf %148, %149 : vector<16x1xf32>
    %151 = vector.broadcast %150 : vector<16x1xf32> to vector<16x32xf32>
    %152 = arith.subf %146, %151 : vector<16x32xf32>
    %153 = arith.mulf %152, %152 : vector<16x32xf32>
    %cst_114 = arith.constant dense<0.000000e+00> : vector<16xf32>
    %154 = vector.multi_reduction <add>, %153, %cst_114 [1] : vector<16x32xf32> to vector<16xf32>
    %155 = vector.shape_cast %154 : vector<16xf32> to vector<16x1xf32>
    %cst_115 = arith.constant 3.200000e+01 : f32
    %156 = vector.broadcast %cst_115 : f32 to vector<16x1xf32>
    %157 = arith.divf %155, %156 : vector<16x1xf32>
    %158 = vector.broadcast %150 : vector<16x1xf32> to vector<16x32xf32>
    %159 = arith.subf %146, %158 : vector<16x32xf32>
    %cst_116 = arith.constant 9.99999974E-6 : f32
    %160 = vector.broadcast %cst_116 : f32 to vector<16x1xf32>
    %161 = arith.addf %157, %160 : vector<16x1xf32>
    %162 = math.rsqrt %161 : vector<16x1xf32>
    %163 = vector.broadcast %162 : vector<16x1xf32> to vector<16x32xf32>
    %164 = arith.mulf %159, %163 : vector<16x32xf32>
    %165 = vector.broadcast %6 : vector<1x32xf32> to vector<16x32xf32>
    %166 = arith.mulf %164, %165 : vector<16x32xf32>
    %167 = vector.broadcast %8 : vector<1x32xf32> to vector<16x32xf32>
    %168 = arith.addf %166, %167 : vector<16x32xf32>
    %c0_117 = arith.constant 0 : index
    %c0_118 = arith.constant 0 : index
    %c0_119 = arith.constant 0 : index
    %169 = vector.load %arg10[%c0_117, %c0_118, %c0_119] : memref<1x32x64xf32, #tpu.memory_space<vmem>>, vector<1x32x64xf32>
    %170 = vector.shape_cast %169 : vector<1x32x64xf32> to vector<32x64xf32>
    %cst_120 = arith.constant dense<0.000000e+00> : vector<16x64xf32>
    %171 = tpu.matmul %168, %170, %cst_120 {dimension_numbers = #tpu.dot_dimension_numbers<[1], [0], [0], [1], [0, 0, 1, 1], [], []>} : vector<16x32xf32>, vector<32x64xf32>, vector<16x64xf32> -> vector<16x64xf32>
    %c0_121 = arith.constant 0 : index
    %c0_122 = arith.constant 0 : index
    %c0_123 = arith.constant 0 : index
    %172 = vector.load %arg11[%c0_121, %c0_122, %c0_123] : memref<1x1x64xf32, #tpu.memory_space<vmem>>, vector<1x1x64xf32>
    %173 = vector.shape_cast %172 : vector<1x1x64xf32> to vector<1x64xf32>
    %174 = vector.broadcast %173 : vector<1x64xf32> to vector<16x64xf32>
    %175 = arith.addf %171, %174 : vector<16x64xf32>
    %cst_124 = arith.constant 0.000000e+00 : f32
    %176 = vector.broadcast %cst_124 : f32 to vector<16x64xf32>
    %177 = arith.maximumf %175, %176 : vector<16x64xf32>
    %c0_125 = arith.constant 0 : index
    %c0_126 = arith.constant 0 : index
    %c0_127 = arith.constant 0 : index
    %178 = vector.load %arg12[%c0_125, %c0_126, %c0_127] : memref<1x64x32xf32, #tpu.memory_space<vmem>>, vector<1x64x32xf32>
    %179 = vector.shape_cast %178 : vector<1x64x32xf32> to vector<64x32xf32>
    %cst_128 = arith.constant dense<0.000000e+00> : vector<16x32xf32>
    %180 = tpu.matmul %177, %179, %cst_128 {dimension_numbers = #tpu.dot_dimension_numbers<[1], [0], [0], [1], [0, 0, 1, 1], [], []>} : vector<16x64xf32>, vector<64x32xf32>, vector<16x32xf32> -> vector<16x32xf32>
    %c0_129 = arith.constant 0 : index
    %c0_130 = arith.constant 0 : index
    %c0_131 = arith.constant 0 : index
    %181 = vector.load %arg13[%c0_129, %c0_130, %c0_131] : memref<1x1x32xf32, #tpu.memory_space<vmem>>, vector<1x1x32xf32>
    %182 = vector.shape_cast %181 : vector<1x1x32xf32> to vector<1x32xf32>
    %183 = vector.broadcast %182 : vector<1x32xf32> to vector<16x32xf32>
    %184 = arith.addf %180, %183 : vector<16x32xf32>
    %185 = arith.addf %184, %168 : vector<16x32xf32>
    %cst_132 = arith.constant dense<0.000000e+00> : vector<16xf32>
    %186 = vector.multi_reduction <add>, %185, %cst_132 [1] : vector<16x32xf32> to vector<16xf32>
    %187 = vector.shape_cast %186 : vector<16xf32> to vector<16x1xf32>
    %cst_133 = arith.constant 3.200000e+01 : f32
    %188 = vector.broadcast %cst_133 : f32 to vector<16x1xf32>
    %189 = arith.divf %187, %188 : vector<16x1xf32>
    %190 = vector.broadcast %189 : vector<16x1xf32> to vector<16x32xf32>
    %191 = arith.subf %185, %190 : vector<16x32xf32>
    %192 = arith.mulf %191, %191 : vector<16x32xf32>
    %cst_134 = arith.constant dense<0.000000e+00> : vector<16xf32>
    %193 = vector.multi_reduction <add>, %192, %cst_134 [1] : vector<16x32xf32> to vector<16xf32>
    %194 = vector.shape_cast %193 : vector<16xf32> to vector<16x1xf32>
    %cst_135 = arith.constant 3.200000e+01 : f32
    %195 = vector.broadcast %cst_135 : f32 to vector<16x1xf32>
    %196 = arith.divf %194, %195 : vector<16x1xf32>
    %197 = vector.broadcast %189 : vector<16x1xf32> to vector<16x32xf32>
    %198 = arith.subf %185, %197 : vector<16x32xf32>
    %cst_136 = arith.constant 9.99999974E-6 : f32
    %199 = vector.broadcast %cst_136 : f32 to vector<16x1xf32>
    %200 = arith.addf %196, %199 : vector<16x1xf32>
    %201 = math.rsqrt %200 : vector<16x1xf32>
    %202 = vector.broadcast %201 : vector<16x1xf32> to vector<16x32xf32>
    %203 = arith.mulf %198, %202 : vector<16x32xf32>
    %204 = vector.broadcast %6 : vector<1x32xf32> to vector<16x32xf32>
    %205 = arith.mulf %203, %204 : vector<16x32xf32>
    %206 = vector.broadcast %8 : vector<1x32xf32> to vector<16x32xf32>
    %207 = arith.addf %205, %206 : vector<16x32xf32>
    %c0_137 = arith.constant 0 : index
    %c0_138 = arith.constant 0 : index
    %208 = vector.load %arg16[%c0_137, %c0_138] : memref<16x32xf32, #tpu.memory_space<vmem>>, vector<16x32xf32>
    tpu.vector_store %arg16[%c0_137, %c0_138], %207 {strides = array<i32>} : memref<16x32xf32, #tpu.memory_space<vmem>>, vector<16x32xf32>,
    %c1_i32 = arith.constant 1 : i32
    %209 = arith.cmpi eq, %arg1, %c1_i32 : i32
    %210 = arith.extui %209 : i1 to i32
    %c0_i32_139 = arith.constant 0 : i32
    %211 = arith.cmpi ne, %210, %c0_i32_139 : i32
    scf.if %211 {
      %c0_140 = arith.constant 0 : index
      %c0_141 = arith.constant 0 : index
      %212 = vector.load %arg14[%c0_140, %c0_141] : memref<16x32xf32, #tpu.memory_space<vmem>>, vector<16x32xf32>
      tpu.vector_store %arg14[%c0_140, %c0_141], %207 {strides = array<i32>} : memref<16x32xf32, #tpu.memory_space<vmem>>, vector<16x32xf32>,
    } else {
    }
    return
  }
  func.func @transform_0(%arg0: i32, %arg1: i32) -> (i32, i32) {
    %c0_i32 = arith.constant 0 : i32
    %c0_i32_0 = arith.constant 0 : i32
    return %arg0, %c0_i32 : i32, i32
  }
  func.func @transform_1(%arg0: i32, %arg1: i32) -> (i32, i32, i32) {
    %c0_i32 = arith.constant 0 : i32
    %c0_i32_0 = arith.constant 0 : i32
    %c0_i32_1 = arith.constant 0 : i32
    return %arg0, %c0_i32, %c0_i32_0 : i32, i32, i32
  }
  func.func @transform_2(%arg0: i32, %arg1: i32) -> (i32, i32, i32, i32) {
    %c0_i32 = arith.constant 0 : i32
    %c0_i32_0 = arith.constant 0 : i32
    %c0_i32_1 = arith.constant 0 : i32
    %c0_i32_2 = arith.constant 0 : i32
    return %arg1, %c0_i32, %c0_i32_0, %c0_i32_1 : i32, i32, i32, i32
  }
  func.func @transform_3(%arg0: i32, %arg1: i32) -> (i32, i32, i32, i32) {
    %c0_i32 = arith.constant 0 : i32
    %c0_i32_0 = arith.constant 0 : i32
    %c0_i32_1 = arith.constant 0 : i32
    %c0_i32_2 = arith.constant 0 : i32
    return %arg1, %c0_i32, %c0_i32_0, %c0_i32_1 : i32, i32, i32, i32
  }
  func.func @transform_4(%arg0: i32, %arg1: i32) -> (i32, i32, i32, i32) {
    %c0_i32 = arith.constant 0 : i32
    %c0_i32_0 = arith.constant 0 : i32
    %c0_i32_1 = arith.constant 0 : i32
    %c0_i32_2 = arith.constant 0 : i32
    return %arg1, %c0_i32, %c0_i32_0, %c0_i32_1 : i32, i32, i32, i32
  }
  func.func @transform_5(%arg0: i32, %arg1: i32) -> (i32, i32, i32, i32) {
    %c0_i32 = arith.constant 0 : i32
    %c0_i32_0 = arith.constant 0 : i32
    %c0_i32_1 = arith.constant 0 : i32
    %c0_i32_2 = arith.constant 0 : i32
    return %arg1, %c0_i32, %c0_i32_0, %c0_i32_1 : i32, i32, i32, i32
  }
  func.func @transform_6(%arg0: i32, %arg1: i32) -> (i32, i32, i32) {
    %c0_i32 = arith.constant 0 : i32
    %c0_i32_0 = arith.constant 0 : i32
    %c0_i32_1 = arith.constant 0 : i32
    return %arg1, %c0_i32, %c0_i32_0 : i32, i32, i32
  }
  func.func @transform_7(%arg0: i32, %arg1: i32) -> (i32, i32, i32) {
    %c0_i32 = arith.constant 0 : i32
    %c0_i32_0 = arith.constant 0 : i32
    %c0_i32_1 = arith.constant 0 : i32
    return %arg1, %c0_i32, %c0_i32_0 : i32, i32, i32
  }
  func.func @transform_8(%arg0: i32, %arg1: i32) -> (i32, i32, i32) {
    %c0_i32 = arith.constant 0 : i32
    %c0_i32_0 = arith.constant 0 : i32
    %c0_i32_1 = arith.constant 0 : i32
    return %arg1, %c0_i32, %c0_i32_0 : i32, i32, i32
  }
  func.func @transform_9(%arg0: i32, %arg1: i32) -> (i32, i32, i32) {
    %c0_i32 = arith.constant 0 : i32
    %c0_i32_0 = arith.constant 0 : i32
    %c0_i32_1 = arith.constant 0 : i32
    return %arg1, %c0_i32, %c0_i32_0 : i32, i32, i32
  }
  func.func @transform_10(%arg0: i32, %arg1: i32) -> (i32, i32, i32) {
    %c0_i32 = arith.constant 0 : i32
    %c0_i32_0 = arith.constant 0 : i32
    %c0_i32_1 = arith.constant 0 : i32
    return %arg1, %c0_i32, %c0_i32_0 : i32, i32, i32
  }
  func.func @transform_11(%arg0: i32, %arg1: i32) -> (i32, i32, i32) {
    %c0_i32 = arith.constant 0 : i32
    %c0_i32_0 = arith.constant 0 : i32
    %c0_i32_1 = arith.constant 0 : i32
    return %arg1, %c0_i32, %c0_i32_0 : i32, i32, i32
  }
  func.func @transform_12(%arg0: i32, %arg1: i32) -> (i32, i32) {
    %c0_i32 = arith.constant 0 : i32
    %c0_i32_0 = arith.constant 0 : i32
    return %arg0, %c0_i32 : i32, i32
  }
  func.func @transform_13(%arg0: i32, %arg1: i32) -> (i32, i32, i32, i32) {
    %c0_i32 = arith.constant 0 : i32
    %c0_i32_0 = arith.constant 0 : i32
    %c0_i32_1 = arith.constant 0 : i32
    return %arg1, %arg0, %c0_i32, %c0_i32_0 : i32, i32, i32, i32
  }
}

</mosaic_0001>

<bundles_post_ra>
// kernel: tpu_custom_call.1
= control target key start
LH: loop header
LB: loop body
LE: loop exit
PB: predicated region body
PF: predicated region fallthrough
CT: control target
= control target key end

     0   :  { %s5319_s0 = inlined_call_operand.vmem [shape: f32[16,32], index: 0, kind: input, shape index: {}]   ;;  %s5320_s1 = inlined_call_operand.vmem [shape: f32[2,1,8], index: 1, kind: input, shape index: {}]   ;;  %s5321_s2 = inlined_call_operand.vmem [shape: f32[2,4,32,8], index: 2, kind: input, shape index: {}]   ;;  %s5322_s3 = inlined_call_operand.vmem [shape: f32[2,4,32,8], index: 3, kind: input, shape index: {}]   ;;  %s5323_s4 = inlined_call_operand.vmem [shape: f32[2,4,32,8], index: 4, kind: input, shape index: {}]   ;;  %s5324_s5 = inlined_call_operand.vmem [shape: f32[2,4,8,32], index: 5, kind: input, shape index: {}]   ;;  %s5325_s6 = inlined_call_operand.vmem [shape: f32[2,1,32], index: 6, kind: input, shape index: {}]   ;;  %s5326_s7 = inlined_call_operand.vmem [shape: f32[2,1,32], index: 7, kind: input, shape index: {}]   ;;  %s5327_s8 = inlined_call_operand.vmem [shape: f32[2,32,64], index: 8, kind: input, shape index: {}]   ;;  %s5328_s9 = inlined_call_operand.vmem [shape: f32[2,1,64], index: 9, kind: input, shape index: {}]   ;;  %s5329_s10 = inlined_call_operand.vmem [shape: f32[2,64,32], index: 10, kind: input, shape index: {}]   ;;  %s5330_s11 = inlined_call_operand.vmem [shape: f32[2,1,32], index: 11, kind: input, shape index: {}]   ;;  %s5331_s12 = inlined_call_operand.hbm [shape: f32[16,32], index: 12, kind: output, shape index: {0}]   ;;  %s5332_s13 = inlined_call_operand.hbm [shape: f32[2,2,8,32], index: 13, kind: output, shape index: {1}]  }
   0x1   :  { %5349 = sst [smem:[#allocation19_spill]] %s5320_s1 }
   0x2   :  { %5350 = sst [smem:[#allocation20_spill]] %s5321_s2 }
   0x3   :  { %5351 = sst [smem:[#allocation21_spill]] %s5322_s3 }
   0x4   :  { %5352 = sst [smem:[#allocation22_spill]] %s5323_s4 }
   0x5   :  { %5353 = sst [smem:[#allocation23_spill]] %s5324_s5 }
   0x6   :  { %5354 = sst [smem:[#allocation24_spill]] %s5331_s12 }
   0x7   :  { %5355 = sst [smem:[#allocation25_spill]] %s5332_s13 }
   0x8   :  { %19 = vsyncpa [#allocation4], 0 }
   0x9   :  { %20 = vsyncpa [#allocation6], 0 }
   0xa   :  { %22 = vsyncpa [#allocation6 + $0x1], 0  ;;  %s4783_s25 = smov 0   ;;  %s4785_s26 = smov 0  }
   0xb   :  { %s4787_s27 = smov 0   ;;  %s4789_s28 = smov 0  }
   0xc   :  { %s4791_s29 = smov 0   ;;  %s4793_s30 = smov 0  }
   0xd LB: > { %5356 = sst [smem:[#allocation9_spill]] %s4683_s25  ;;  %s3826_s14 = sadd.s32 4294967295, %s4703_s30   ;;  %s4703_s30 = sphi %s4793_s30, %s28_s30   ;;  %s4699_s29 = sphi %s4791_s29, %s5390_s29   ;;  %s4695_s28 = sphi %s4789_s28, %s5389_s28   ;;  %s4691_s27 = sphi %s4787_s27, %s5388_s27   ;;  %s4687_s26 = sphi %s4785_s26, %s5387_s26   ;;  %s4683_s25 = sphi %s4783_s25, %s5386_s25  }
   0xe   : > { %5357 = sst [smem:[#allocation10_spill]] %s4687_s26  ;;  %s3827_s15 = sadd.s32 4294967294, %s4703_s30  }
   0xf   : > { %5358 = sst [smem:[#allocation11_spill]] %s4691_s27  ;;  %s37_s16 = sadd.s32 1, %s4699_s29 }
  0x10   : > { %5359 = sst [smem:[#allocation12_spill]] %s4699_s29  ;;  %s387_s17 = sadd.s32 1, %s4691_s27 }
  0x11   : > { %5360 = sst [smem:[#allocation13_spill]] %s4703_s30  ;;  %p38_p0 = scmp.ge.s32.totalorder %s37_s16, 2 }
  0x12   : > { %p397_p1 = scmp.ne.s32.totalorder %s4691_s27, %s4687_s26  ;;  %p4819_p2 = scmp.eq.s32.totalorder %s3826_s14, 1 }
  0x13   : > { %p403_p3 = scmp.ne.s32.totalorder %s4687_s26, %s4683_s25  ;;  %s5392_s16 = smov (%p38_p0, %s37_s16), 0 }
  0x14   : > { %s5361_s18 = scalar_select %p4819_p2, 1, 0 }
  0x15   : > { %5363 = sst [smem:[#allocation15_spill]] %s5392_s16  ;;  %p4829_p4 = por %p4819_p2, %p397_p1 }
  0x16   : > { %5362 = sst [smem:[#allocation14_spill]] %s5361_s18  ;;  %p404_p5 = scmp.eq.s32.totalorder %s3827_s15, 1 }
  0x17   : > { %s5364_s19 = scalar_select %p4829_p4, 1, 0 }
  0x18   : > { %s382_s20 = ssub.s32 %s4699_s29, %s5392_s16  ;;  %p3832_p6 = scmp.ge.s32.totalorder %s4703_s30, 1 }
  0x19   : > { %5365 = sst [smem:[#allocation16_spill]] %s5364_s19  ;;  %p385_p7 = scmp.eq.s32.totalorder %s382_s20, 0 }
  0x1a   : > { %p4836_p8 = por %p404_p5, %p403_p3  ;;  %p511_p9 = scmp.lt.s32.totalorder %s4703_s30, 3 }
  0x1b   : > { %s4842_s22 = scalar_select %p385_p7, %s4691_s27, %s387_s17  }
  0x1c   : > { %s5366_s21 = scalar_select %p4836_p8, 1, 0 }
  0x1d   : > { %5368 = sst [smem:[#allocation18_spill]] %s4842_s22  ;;  %p512_p10 = pnand %p3832_p6, %p511_p9 }
  0x1e   : > { %5367 = sst [smem:[#allocation17_spill]] %s5366_s21  ;;  %s5336_s23 = sand.u32 (!%p512_p10), 1, %s4687_s26  }
  0x1f   : > { %515 = sbr.rel (%p512_p10) target bundleno = 5074 (0x13d2), region = 68  ;;  %p612_p11 = scmp.lt.s32.totalorder (!%p512_p10), %s4695_s28, 1 }
  0x20   : > { %s3833_s24 = sshll.u32 (!%p512_p10), %s5336_s23, 4  ;;  %s5369_s2 = sld [smem:[#allocation20_spill]] (!%p512_p10) }
  0x21   : > { %s5370_s3 = sld [smem:[#allocation21_spill]] (!%p512_p10)  ;;  %s5371_s4 = sld [smem:[#allocation22_spill]] (!%p512_p10) }
  0x22   : > { %s5372_s5 = sld [smem:[#allocation23_spill]] (!%p512_p10)  ;;  %p3846_p12 = scmp.ne.s32.totalorder (!%p512_p10), %s4695_s28, 0 }
  0x26   : > { %s4849_s14 = scalar_select %p612_p11, %s4695_s28, 1 }
  0x27   : > { %v660_v0 = vld [vmem:[%s5319_s0] sm:$0xff] (!%p3846_p12)  ;;  %vm662_vm0 = vcmask (!%p3846_p12), 261120   ;;  %v661_v1 = vld [vmem:[%s5319_s0 + $0x8] sm:$0xff] (!%p3846_p12) }
  0x28   : > { %s3960_s15 = sshll.u32 %s4849_s14, 7  ;;  %s3963_s17 = sshll.u32 %s4849_s14, 5  ;;  %663 = vst.msk [vmem:[#allocation2] sm:$0xff] (!%p3846_p12), %vm662_vm0, %v660_v0  ;;  %664 = vst.msk [vmem:[#allocation2 + $0x8] sm:$0xff] (!%p3846_p12), %vm662_vm0, %v661_v1 }
  0x29   : > { %s4856_s29 = scalar_lea.vmem %s5369_s2, %s3960_s15  ;;  %s4861_s23 = scalar_lea.vmem %s5370_s3, %s3960_s15 }
  0x2a   : > { %s4866_s30 = scalar_lea.vmem %s5371_s4, %s3960_s15  ;;  %s4871_s26 = scalar_lea.vmem %s5372_s5, %s3963_s17 }
  0x2b   : > { %s637_s27 = scalar_lea.vmem %s5326_s7, %s4849_s14  ;;  %s4884_s1 = scalar_lea.vmem %s5327_s8, %s3963_s17 }
  0x2c   : > { %s645_s15 = scalar_lea.vmem %s5328_s9, %s4849_s14  ;;  %s3965_s13 = sshll.u32 %s4849_s14, 6 }
  0x2d   : > { %s653_s5 = scalar_lea.vmem %s5330_s11, %s4849_s14  ;;  %s4898_s16 = scalar_lea.vmem %s5329_s10, %s3965_s13 }
  0x2e   : > { %s4900_s2 = scalar_lea.vmem [#allocation5], %s3833_s24  ;;  %659 = sbr.rel (%p3846_p12) target bundleno = 53 (0x35), region = 72 }
  0x35 PF: > { %v671_v2 = vld [vmem:[%s4856_s29] sm:$0xff]  ;;  %v672_v3 = vld [vmem:[%s4856_s29 + $0x8] sm:$0xff]  ;;  %v673_v4 = vld [vmem:[%s4856_s29 + $0x10] sm:$0xff]  ;;  %vm675_vm1 = vcmask 261120   ;;  %v4705_v16 = vmov 0.0   ;;  %vm4706_vm2 = vmmov 0  }
  0x36   : > { %v4361_v5 = vpack.c.bf16 %v672_v3, %v671_v2  ;;  %v674_v6 = vld [vmem:[%s4856_s29 + $0x18] sm:$0xff]  ;;  %v4913_v7 = vld [vmem:[#allocation2] sm:$0xff]  ;;  %v758_v10 = vld [vmem:[%s4861_s23 + $0x8] sm:$0xff]  ;;  %vm915_vm3 = vcmask 64512   ;;  %s5373_s25 = sld [smem:[#allocation19_spill]]  ;;  %vm3461_vm4 = vcmask 523264  }
  0x37   : > { %v4365_v8 = vpack.c.bf16 %v674_v6, %v673_v4  ;;  %4107 = vmatprep.mubr.msk.f32.mxu1 %vm675_vm1, %v4913_v7  ;;  %v757_v9 = vld [vmem:[%s4861_s23] sm:$0xff]  ;;  %4129 = vmatprep.mubr.msk.f32.mxu0 %vm675_vm1, %v4913_v7  ;;  %v759_v12 = vld [vmem:[%s4861_s23 + $0x10] sm:$0xff]  ;;  %v760_v13 = vld [vmem:[%s4861_s23 + $0x18] sm:$0xff]  ;;  %vm3299_vm5 = vcmask 130048   ;;  %vm3302_vm6 = vcmask 195584   ;;  %p3952_p13 = scmp.ne.s32.totalorder %s4695_s28, 1 }
  0x38   : > { %4362 = vmatprep.subr.bf16.mxu1 %v4361_v5  ;;  %v4369_v11 = vpack.c.bf16 %v758_v10, %v757_v9  ;;  %v4923_v14 = vld [vmem:[#allocation2 + $0x8] sm:$0xff]  ;;  %v4373_v15 = vpack.c.bf16 %v760_v13, %v759_v12  ;;  %v836_v21 = vld [vmem:[%s4866_s30] sm:$0xff]  ;;  %v838_v23 = vld [vmem:[%s4866_s30 + $0x10] sm:$0xff] }
  0x39   : > { %4364 = vmatpush3.bf16.msra.mxu1 %v4361_v5  ;;  %v837_v22 = vld [vmem:[%s4866_s30 + $0x8] sm:$0xff]  ;;  %v839_v25 = vld [vmem:[%s4866_s30 + $0x18] sm:$0xff]  ;;  %v3867_v49 = vld [vmem:[%s4861_s23 + $0x20] sm:$0xff] }
  0x3a   : > { %4366 = vmatprep.subr.bf16.mxu1 %v4365_v8  ;;  %v4377_v24 = vpack.c.bf16 %v837_v22, %v836_v21  ;;  %v4381_v26 = vpack.c.bf16 %v839_v25, %v838_v23  ;;  %v3868_v50 = vld [vmem:[%s4861_s23 + $0x28] sm:$0xff]  ;;  %v3861_v54 = vld [vmem:[%s4856_s29 + $0x20] sm:$0xff]  ;;  %v3869_v59 = vld [vmem:[%s4861_s23 + $0x30] sm:$0xff] }
  0x3b   : > { %v4393_v52 = vpack.c.bf16 %v3868_v50, %v3867_v49  ;;  %v3862_v55 = vld [vmem:[%s4856_s29 + $0x28] sm:$0xff]  ;;  %v3870_v60 = vld [vmem:[%s4861_s23 + $0x38] sm:$0xff]  ;;  %v3863_v0 = vld [vmem:[%s4856_s29 + $0x30] sm:$0xff] }
  0x3c   : > { %4378 = vmatprep.subr.bf16.mxu0 %v4377_v24  ;;  %s5374_s21 = smov %s5373_s25  ;;  %v4956_v30 = vld [vmem:[%s5373_s25 + $0x1] ss:$0 sm:$0xff]  ;;  %v4385_v56 = vpack.c.bf16 %v3862_v55, %v3861_v54  ;;  %v4397_v63 = vpack.c.bf16 %v3870_v60, %v3869_v59  ;;  %v3864_v1 = vld [vmem:[%s4856_s29 + $0x38] sm:$0xff]  ;;  %v3891_v55 = vld [vmem:[%s4856_s29 + $0x48] sm:$0xff] }
  0x3d   : > { %4368 = vmatpush3.bf16.msra.mxu1 %v4365_v8  ;;  %4380 = vmatpush3.bf16.msra.mxu0 %v4377_v24  ;;  %v4961_v34 = vld [vmem:[%s5374_s21] ss:$0 sm:$0xff]  ;;  %v4389_v4 = vpack.c.bf16 %v3864_v1, %v3863_v0  ;;  %v3905_v1 = vld [vmem:[%s4866_s30 + $0x58] sm:$0xff] }
  0x3e   : > { %4370 = vmatprep.subr.bf16.mxu1 %v4369_v11  ;;  %4382 = vmatprep.subr.bf16.mxu0 %v4381_v26  ;;  %v3890_v54 = vld [vmem:[%s4856_s29 + $0x40] sm:$0xff] }
  0x3f   : > { %v3902_v60 = vld [vmem:[%s4866_s30 + $0x40] sm:$0xff] }
  0x40   : > { %4108 = vmatmul.mubr.msk.f32.vlgmr.msra.gmra.mrb[0].mxu1 %vm675_vm1, %v4923_v14 }
  0x41   : > { %4372 = vmatpush3.bf16.msra.mxu1 %v4369_v11  ;;  %4118 = vmatprep.mubr.msk.f32.mxu1 %vm675_vm1, %v4913_v7 }
  0x42   : > { %4374 = vmatprep.subr.bf16.mxu1 %v4373_v15  ;;  %4384 = vmatpush3.bf16.msra.mxu0 %v4381_v26 }
  0x43   : > { %4142 = vmatprep.subr.mxu0 %v4705_v16 }
  0x45   : > { %4376 = vmatpush3.bf16.msra.mxu1 %v4373_v15  ;;  %4130 = vmatmul.mubr.msk.f32.vlgmr.msra.gmra.mrb[0].mxu0 %vm675_vm1, %v4923_v14  ;;  %v3873_v15 = vld [vmem:[%s4866_s30 + $0x20] sm:$0xff] }
  0x46   : > { %4132 = vmatprep.subr.mxu1 %v4705_v16  ;;  %4144 = vmatprep.mubr.msk.f32.mxu0 %vm4706_vm2, %v4705_v16 }
  0x48   : > { %4119 = vmatmul.mubr.msk.f32.vlgmr.msra.gmra.mrb[2].mxu1 %vm675_vm1, %v4923_v14 }
  0x49   : > { %4134 = vmatprep.mubr.msk.f32.mxu1 %vm4706_vm2, %v4705_v16 }
 0x113   : > { %v4109_v17 = vpop.f32.mrb[0].mxu1 }
 0x114   : > { %v748_v18 = vpop.f32.mrb[1].mxu1 }
 0x118   : > { %v4131_v51 = vpop.f32.mrb[0].mxu0 }
 0x119   : > { %v906_v53 = vpop.f32.mrb[1].mxu0 }
 0x11a   : > { %4143 = vmatpush3.msra.mxu0 %v906_v53  ;;  %v1252_v53 = vld [vmem:[%s4871_s26] sm:$0xff] }
 0x11b   : > { %v4120_v19 = vpop.f32.mrb[2].mxu1  ;;  %4386 = vmatprep.subr.bf16.mxu0 %v4385_v56 }
 0x11c   : > { %v827_v20 = vpop.f32.mrb[3].mxu1 }
 0x11d   : > { %4133 = vmatpush3.xpose.msk.msra.mxu1 %vm915_vm3, %v827_v20  ;;  %v3876_v20 = vld [vmem:[%s4866_s30 + $0x38] sm:$0xff] }
 0x11e   : > { %4137 = vmatprep.subr.mxu1 %v4705_v16 }
 0x120   : > { %4135 = vmatmul.mubr.msk.f32.vlgmr.msra.gmra.mrb[4].mxu1 %vm915_vm3, %v748_v18  ;;  %v3875_v18 = vld [vmem:[%s4866_s30 + $0x30] sm:$0xff] }
 0x121   : > { %4138 = vmatpush3.xpose.msk.msra.mxu1 %vm915_vm3, %v4120_v19  ;;  %4139 = vmatprep.mubr.msk.f32.mxu1 %vm4706_vm2, %v4705_v16  ;;  %v4405_v21 = vpack.c.bf16 %v3876_v20, %v3875_v18 }
 0x122   : > { %4147 = vmatprep.subr.mxu1 %v4705_v16 }
 0x124   : > { %4140 = vmatmul.mubr.msk.f32.vlgmr.msra.gmra.mrb[6].mxu1 %vm915_vm3, %v4109_v17  ;;  %v3874_v17 = vld [vmem:[%s4866_s30 + $0x28] sm:$0xff] }
 0x125   : > { %4149 = vmatprep.mubr.msk.f32.mxu1 %vm4706_vm2, %v4705_v16  ;;  %4148 = vmatpush3.msra.mxu1 %v4131_v51  ;;  %v4401_v19 = vpack.c.bf16 %v3874_v17, %v3873_v15  ;;  %v3898_v15 = vld [vmem:[%s4861_s23 + $0x50] sm:$0xff]  ;;  %v3899_v17 = vld [vmem:[%s4861_s23 + $0x58] sm:$0xff] }
 0x126   : > { %4394 = vmatprep.subr.bf16.mxu1 %v4393_v52  ;;  %v4421_v18 = vpack.c.bf16 %v3899_v17, %v3898_v15  ;;  %v3929_v17 = vld [vmem:[%s4866_s30 + $0x60] sm:$0xff] }
 0x1f3   : > { %v988_v27 = vpop.f32.mrb[4].mxu1 }
 0x1f4   : > { %v4136_v28 = vpop.f32.mrb[5].mxu1  ;;  %v1068_v31 = vmul.f32 0.35355338, %v988_v27 }
 0x1f6   : > { %v1082_v37 = vadd.f32 %v4961_v34, %v1068_v31 }
 0x1f7   : > { %v1064_v29 = vpop.f32.mrb[6].mxu1 }
 0x1f8   : > { %v1069_v32 = vmul.f32 0.35355338, %v1064_v29  ;;  %v4141_v33 = vpop.f32.mrb[7].mxu1  ;;  %v1084_v38 = vsel %vm915_vm3, %v1082_v37, -inf }
 0x1fa   : > { %v1083_v35 = vadd.f32 %v4956_v30, %v1069_v32 }
 0x1fc   : > { %v1087_v36 = vsel %vm915_vm3, %v1083_v35, -inf }
 0x1fd   : > { %1088 = vmax.xlane.f32.xlu0 %v1087_v36 }
 0x201   : > { %1085 = vmax.xlane.f32.xlu0 %v1084_v38 }
 0x28a   : > { %v1089_v39 = vpop.xlane.xlu0 %1088 }
 0x28b   : > { %v1091_v40 = vsub.f32 %v1083_v35, %v1089_v39 }
 0x28d   : > { %v1094_v41 = vmul.f32 1.442695, %v1091_v40 }
 0x28e   : > { %v1086_v42 = vpop.xlane.xlu0 %1085 }
 0x28f   : > { %4555 = vpow2.f32 %v1094_v41  ;;  %v1090_v43 = vsub.f32 %v1082_v37, %v1086_v42 }
 0x291   : > { %v1092_v44 = vmul.f32 1.442695, %v1090_v43 }
 0x293   : > { %4557 = vpow2.f32 %v1092_v44 }
 0x299   : > { %v4556_v45 = vpop.eup %4555 }
 0x29a   : > { %v1099_v46 = vsel %vm915_vm3, %v4556_v45, 0.0 }
 0x29b   : > { %1100 = vadd.xlane.f32.xlu1 %v1099_v46 }
 0x29d   : > { %v4558_v47 = vpop.eup %4557 }
 0x29e   : > { %v1096_v48 = vsel %vm915_vm3, %v4558_v47, 0.0 }
 0x29f   : > { %1097 = vadd.xlane.f32.xlu1 %v1096_v48 }
 0x328   : > { %v1101_v57 = vpop.xlane.xlu1 %1100 }
 0x329   : > { %4559 = vrcp.f32 %v1101_v57  ;;  %v3892_v57 = vld [vmem:[%s4856_s29 + $0x50] sm:$0xff] }
 0x32c   : > { %v1098_v58 = vpop.xlane.xlu1 %1097 }
 0x32d   : > { %4561 = vrcp.f32 %v1098_v58  ;;  %v3893_v58 = vld [vmem:[%s4856_s29 + $0x58] sm:$0xff] }
 0x32e   : > { %v4413_v59 = vpack.c.bf16 %v3893_v58, %v3892_v57  ;;  %v3917_v57 = vld [vmem:[%s4856_s29 + $0x60] sm:$0xff]  ;;  %v3918_v58 = vld [vmem:[%s4856_s29 + $0x68] sm:$0xff] }
 0x333   : > { %v4560_v61 = vpop.eup %4559 }
 0x334   : > { %v4975_v62 = vmul.f32 %v4560_v61, %v4556_v45  ;;  %v3903_v61 = vld [vmem:[%s4866_s30 + $0x48] sm:$0xff] }
 0x335   : > { %v4425_v0 = vpack.c.bf16 %v3903_v61, %v3902_v60  ;;  %v3919_v60 = vld [vmem:[%s4856_s29 + $0x70] sm:$0xff]  ;;  %v3920_v61 = vld [vmem:[%s4856_s29 + $0x78] sm:$0xff]  ;;  %s5375_s29 = scalar_lea.vmem %s5325_s6, %s4849_s14  ;;  %s4708_s14 = smov 16  }
 0x336   : > { %4150 = vmatmul.mubr.msk.f32.vlgmr.msra.gmra.mrb[8].mxu1 %vm915_vm3, %v4975_v62 }
 0x337   : > { %v4562_v2 = vpop.eup %4561  ;;  %4396 = vmatpush3.bf16.msra.mxu1 %v4393_v52  ;;  %4171 = vmatprep.mubr.msk.f32.mxu1 %vm675_vm1, %v4913_v7  ;;  %v3885_v52 = vld [vmem:[%s4871_s26 + $0x8] sm:$0xff] }
 0x338   : > { %v4983_v3 = vmul.f32 %v4562_v2, %v4558_v47  ;;  %4398 = vmatprep.subr.bf16.mxu1 %v4397_v63 }
 0x33a   : > { %4145 = vmatmul.mubr.msk.f32.vlgmr.msra.gmra.mrb[2].mxu0 %vm915_vm3, %v4983_v3 }
 0x33b   : > { %4388 = vmatpush3.bf16.msra.mxu0 %v4385_v56  ;;  %4400 = vmatpush3.bf16.msra.mxu1 %v4397_v63  ;;  %v4409_v56 = vpack.c.bf16 %v3891_v55, %v3890_v54  ;;  %v3904_v63 = vld [vmem:[%s4866_s30 + $0x50] sm:$0xff]  ;;  %v3923_v54 = vld [vmem:[%s4861_s23 + $0x60] sm:$0xff]  ;;  %v3924_v55 = vld [vmem:[%s4861_s23 + $0x68] sm:$0xff] }
 0x33c   : > { %4390 = vmatprep.subr.bf16.mxu0 %v4389_v4  ;;  %4160 = vmatprep.mubr.msk.f32.mxu0 %vm675_vm1, %v4913_v7  ;;  %v4429_v2 = vpack.c.bf16 %v3905_v1, %v3904_v63  ;;  %v4437_v63 = vpack.c.bf16 %v3920_v61, %v3919_v60  ;;  %v3926_v1 = vld [vmem:[%s4861_s23 + $0x78] sm:$0xff] }
 0x33d   : > { %4185 = vmatprep.subr.mxu1 %v4705_v16 }
 0x33e   : > { %4172 = vmatmul.mubr.msk.f32.vlgmr.msra.gmra.mrb[10].mxu1 %vm675_vm1, %v4923_v14 }
 0x33f   : > { %4392 = vmatpush3.bf16.msra.mxu0 %v4389_v4  ;;  %4187 = vmatprep.mubr.msk.f32.mxu1 %vm4706_vm2, %v4705_v16 }
 0x340   : > { %4402 = vmatprep.subr.bf16.mxu0 %v4401_v19 }
 0x342   : > { %4161 = vmatmul.mubr.msk.f32.vlgmr.msra.gmra.mrb[4].mxu0 %vm675_vm1, %v4923_v14 }
 0x343   : > { %4182 = vmatprep.mubr.msk.f32.mxu0 %vm675_vm1, %v4913_v7  ;;  %4404 = vmatpush3.bf16.msra.mxu0 %v4401_v19 }
 0x344   : > { %4406 = vmatprep.subr.bf16.mxu0 %v4405_v21 }
 0x347   : > { %4408 = vmatpush3.bf16.msra.mxu0 %v4405_v21 }
 0x348   : > { %4195 = vmatprep.subr.mxu0 %v4705_v16 }
 0x34a   : > { %4183 = vmatmul.mubr.msk.f32.vlgmr.msra.gmra.mrb[6].mxu0 %vm675_vm1, %v4923_v14 }
 0x34b   : > { %4197 = vmatprep.mubr.msk.f32.mxu0 %vm4706_vm2, %v4705_v16 }
 0x409   : > { %v4998_v5 = vpop.f32.mrb[8].mxu1 }
 0x40a   : > { %v4151_v6 = vpop.f32.mrb[9].mxu1 }
 0x40b   : > { %v3896_v6 = vld [vmem:[%s4861_s23 + $0x40] sm:$0xff] }
 0x40d   : > { %v5000_v8 = vpop.f32.mrb[2].mxu0 }
 0x40e   : > { %v4146_v9 = vpop.f32.mrb[3].mxu0 }
 0x40f   : > { %v3897_v9 = vld [vmem:[%s4861_s23 + $0x48] sm:$0xff] }
 0x411   : > { %v4173_v10 = vpop.f32.mrb[10].mxu1 }
 0x412   : > { %v1404_v11 = vpop.f32.mrb[11].mxu1 }
 0x413   : > { %4186 = vmatpush3.xpose.msk.msra.mxu1 %vm915_vm3, %v1404_v11  ;;  %v4417_v11 = vpack.c.bf16 %v3897_v9, %v3896_v6 }
 0x414   : > { %4190 = vmatprep.subr.mxu1 %v4705_v16 }
 0x415   : > { %v4162_v12 = vpop.f32.mrb[4].mxu0 }
 0x416   : > { %v1324_v13 = vpop.f32.mrb[5].mxu0 }
 0x417   : > { %4188 = vmatmul.mubr.msk.f32.vlgmr.msra.gmra.mrb[12].mxu1 %vm915_vm3, %v1324_v13 }
 0x418   : > { %4191 = vmatpush3.xpose.msk.msra.mxu1 %vm915_vm3, %v4173_v10  ;;  %4192 = vmatprep.mubr.msk.f32.mxu1 %vm4706_vm2, %v4705_v16 }
 0x419   : > { %4200 = vmatprep.subr.mxu1 %v4705_v16 }
 0x41b   : > { %4193 = vmatmul.mubr.msk.f32.vlgmr.msra.gmra.mrb[14].mxu1 %vm915_vm3, %v4162_v12 }
 0x41c   : > { %4202 = vmatprep.mubr.msk.f32.mxu1 %vm4706_vm2, %v4705_v16 }
 0x41d   : > { %v4184_v44 = vpop.f32.mrb[6].mxu0 }
 0x41e   : > { %v1484_v45 = vpop.f32.mrb[7].mxu0  ;;  %4201 = vmatpush3.msra.mxu1 %v4184_v44 }
 0x41f   : > { %4196 = vmatpush3.msra.mxu0 %v1484_v45  ;;  %4410 = vmatprep.subr.bf16.mxu1 %v4409_v56  ;;  %v3914_v45 = vld [vmem:[%s4871_s26 + $0x10] sm:$0xff] }
 0x420   : > { %4205 = vmatprep.subr.mxu0 %v3885_v52 }
 0x4ea   : > { %v1565_v22 = vpop.f32.mrb[12].mxu1 }
 0x4eb   : > { %v1645_v23 = vmul.f32 0.35355338, %v1565_v22  ;;  %v4189_v24 = vpop.f32.mrb[13].mxu1 }
 0x4ed   : > { %v1647_v25 = vadd.f32 %v4961_v34, %v1645_v23 }
 0x4ee   : > { %v1641_v26 = vpop.f32.mrb[14].mxu1 }
 0x4ef   : > { %v1646_v27 = vmul.f32 0.35355338, %v1641_v26  ;;  %v4194_v28 = vpop.f32.mrb[15].mxu1  ;;  %v1649_v29 = vsel %vm915_vm3, %v1647_v25, -inf }
 0x4f0   : > { %1650 = vmax.xlane.f32.xlu0 %v1649_v29 }
 0x4f1   : > { %v1648_v31 = vadd.f32 %v4956_v30, %v1646_v27 }
 0x4f3   : > { %v1652_v32 = vsel %vm915_vm3, %v1648_v31, -inf }
 0x4f4   : > { %1653 = vmax.xlane.f32.xlu1 %v1652_v32 }
 0x57d   : > { %v1651_v33 = vpop.xlane.xlu0 %1650 }
 0x57e   : > { %v1655_v35 = vsub.f32 %v1647_v25, %v1651_v33 }
 0x580   : > { %v1657_v36 = vmul.f32 1.442695, %v1655_v35 }
 0x581   : > { %v1654_v37 = vpop.xlane.xlu1 %1653 }
 0x582   : > { %4563 = vpow2.f32 %v1657_v36  ;;  %v1656_v38 = vsub.f32 %v1648_v31, %v1654_v37 }
 0x584   : > { %v1659_v39 = vmul.f32 1.442695, %v1656_v38 }
 0x586   : > { %4565 = vpow2.f32 %v1659_v39 }
 0x58c   : > { %v4564_v40 = vpop.eup %4563 }
 0x58d   : > { %v1661_v41 = vsel %vm915_vm3, %v4564_v40, 0.0 }
 0x58e   : > { %1662 = vadd.xlane.f32.xlu0 %v1661_v41 }
 0x590   : > { %v4566_v42 = vpop.eup %4565 }
 0x591   : > { %v1664_v43 = vsel %vm915_vm3, %v4566_v42, 0.0 }
 0x592   : > { %1665 = vadd.xlane.f32.xlu1 %v1664_v43 }
 0x61b   : > { %v1663_v46 = vpop.xlane.xlu0 %1662 }
 0x61c   : > { %4567 = vrcp.f32 %v1663_v46 }
 0x61f   : > { %v1666_v47 = vpop.xlane.xlu1 %1665 }
 0x620   : > { %4569 = vrcp.f32 %v1666_v47 }
 0x626   : > { %v4568_v48 = vpop.eup %4567 }
 0x627   : > { %v5027_v49 = vmul.f32 %v4568_v48, %v4564_v40 }
 0x629   : > { %4198 = vmatmul.mubr.msk.f32.vlgmr.msra.gmra.mrb[8].mxu0 %vm915_vm3, %v5027_v49 }
 0x62a   : > { %v4570_v50 = vpop.eup %4569  ;;  %4206 = vmatpush3.msra.mxu0 %v3885_v52 }
 0x62b   : > { %v5031_v51 = vmul.f32 %v4570_v50, %v4566_v42  ;;  %4210 = vmatprep.subr.mxu0 %v1252_v53 }
 0x62d   : > { %4203 = vmatmul.mubr.msk.f32.vlgmr.msra.gmra.mrb[16].mxu1 %vm915_vm3, %v5031_v51 }
 0x62e   : > { %4223 = vmatprep.mubr.msk.f32.mxu1 %vm675_vm1, %v4913_v7  ;;  %4412 = vmatpush3.bf16.msra.mxu1 %v4409_v56  ;;  %v4441_v56 = vpack.c.bf16 %v3924_v55, %v3923_v54 }
 0x62f   : > { %4414 = vmatprep.subr.bf16.mxu1 %v4413_v59 }
 0x632   : > { %4416 = vmatpush3.bf16.msra.mxu1 %v4413_v59  ;;  %v4433_v59 = vpack.c.bf16 %v3918_v58, %v3917_v57 }
 0x633   : > { %4426 = vmatprep.subr.bf16.mxu1 %v4425_v0 }
 0x635   : > { %4224 = vmatmul.mubr.msk.f32.vlgmr.msra.gmra.mrb[18].mxu1 %vm675_vm1, %v4923_v14 }
 0x636   : > { %4245 = vmatprep.mubr.msk.f32.mxu1 %vm675_vm1, %v4913_v7  ;;  %4428 = vmatpush3.bf16.msra.mxu1 %v4425_v0  ;;  %v3925_v0 = vld [vmem:[%s4861_s23 + $0x70] sm:$0xff] }
 0x637   : > { %4430 = vmatprep.subr.bf16.mxu1 %v4429_v2  ;;  %v4445_v9 = vpack.c.bf16 %v3926_v1, %v3925_v0 }
 0x63a   : > { %4432 = vmatpush3.bf16.msra.mxu1 %v4429_v2 }
 0x63b   : > { %4253 = vmatprep.subr.mxu1 %v4705_v16 }
 0x63d   : > { %4246 = vmatmul.mubr.msk.f32.vlgmr.msra.gmra.mrb[20].mxu1 %vm675_vm1, %v4923_v14 }
 0x63e   : > { %4255 = vmatprep.mubr.msk.f32.mxu1 %vm4706_vm2, %v4705_v16 }
 0x6fc   : > { %v1740_v4 = vpop.f32.mrb[8].mxu0 }
 0x6fd   : > { %v4199_v10 = vpop.f32.mrb[9].mxu0  ;;  %4207 = vmatprep.mubr.msk.f32.mxu0 %vm915_vm3, %v1740_v4 }
 0x700   : > { %v1813_v12 = vpop.f32.mrb[16].mxu1 }
 0x701   : > { %v4204_v13 = vpop.f32.mrb[17].mxu1  ;;  %4208 = vmatmul.mubr.msk.f32.vlgmr.msra.gmra.mrb[10].mxu0 %vm915_vm3, %v1813_v12 }
 0x702   : > { %4211 = vmatpush3.msra.mxu0 %v1252_v53  ;;  %4212 = vmatprep.mubr.msk.f32.mxu0 %vm915_vm3, %v5000_v8 }
 0x703   : > { %4418 = vmatprep.subr.bf16.mxu0 %v4417_v11 }
 0x708   : > { %v4225_v8 = vpop.f32.mrb[18].mxu1 }
 0x709   : > { %4213 = vmatmul.mubr.msk.f32.vlgmr.msra.gmra.mrb[10].mxu0 %vm915_vm3, %v4998_v5  ;;  %v2052_v19 = vpop.f32.mrb[19].mxu1 }
 0x70a   : > { %4420 = vmatpush3.bf16.msra.mxu0 %v4417_v11  ;;  %4234 = vmatprep.mubr.msk.f32.mxu0 %vm675_vm1, %v4913_v7 }
 0x70b   : > { %4422 = vmatprep.subr.bf16.mxu0 %v4421_v18 }
 0x70e   : > { %4424 = vmatpush3.bf16.msra.mxu0 %v4421_v18  ;;  %v3930_v18 = vld [vmem:[%s4866_s30 + $0x68] sm:$0xff] }
 0x70f   : > { %4248 = vmatprep.subr.mxu0 %v4705_v16 }
 0x710   : > { %v4247_v20 = vpop.f32.mrb[20].mxu1 }
 0x711   : > { %4235 = vmatmul.mubr.msk.f32.vlgmr.msra.gmra.mrb[12].mxu0 %vm675_vm1, %v4923_v14  ;;  %v2212_v21 = vpop.f32.mrb[21].mxu1 }
 0x712   : > { %4250 = vmatprep.mubr.msk.f32.mxu0 %vm4706_vm2, %v4705_v16 }
 0x7e4   : > { %v4236_v22 = vpop.f32.mrb[12].mxu0 }
 0x7e5   : > { %v2132_v5 = vpop.f32.mrb[13].mxu0  ;;  %4254 = vmatpush3.xpose.msk.msra.mxu1 %vm915_vm3, %v4236_v22 }
 0x7e6   : > { %4249 = vmatpush3.xpose.msk.msra.mxu0 %vm915_vm3, %v2132_v5  ;;  %4263 = vmatprep.subr.mxu1 %v4705_v16 }
 0x7e7   : > { %4258 = vmatprep.subr.mxu0 %v4705_v16 }
 0x7e8   : > { %4256 = vmatmul.mubr.msk.f32.vlgmr.msra.gmra.mrb[22].mxu1 %vm915_vm3, %v4225_v8  ;;  %v3931_v8 = vld [vmem:[%s4866_s30 + $0x70] sm:$0xff] }
 0x7e9   : > { %4251 = vmatmul.mubr.msk.f32.vlgmr.msra.gmra.mrb[14].mxu0 %vm915_vm3, %v2052_v19  ;;  %4264 = vmatpush3.msra.mxu1 %v4247_v20  ;;  %v4449_v19 = vpack.c.bf16 %v3930_v18, %v3929_v17  ;;  %v3932_v20 = vld [vmem:[%s4866_s30 + $0x78] sm:$0xff]  ;;  %v3354_v17 = vld [vmem:[%s4884_s1 + $0x10] sm:$0xff] }
 0x7ea   : > { %4259 = vmatpush3.msra.mxu0 %v2212_v21  ;;  %4265 = vmatprep.mubr.msk.f32.mxu1 %vm4706_vm2, %v4705_v16  ;;  %v4453_v21 = vpack.c.bf16 %v3932_v20, %v3931_v8  ;;  %v3355_v18 = vld [vmem:[%s4884_s1 + $0x18] sm:$0xff]  ;;  %v3447_v20 = vld [vmem:[%s4898_s16 + $0x8] sm:$0xff] }
 0x7eb   : > { %4260 = vmatprep.mubr.msk.f32.mxu0 %vm4706_vm2, %v4705_v16  ;;  %4268 = vmatprep.subr.mxu0 %v3914_v45  ;;  %v4461_v8 = vpack.c.bf16 %v3355_v18, %v3354_v17 }
 0x7ec   : > { %4434 = vmatprep.subr.bf16.mxu1 %v4433_v59 }
 0x8bb   : > { %v2369_v23 = vpop.f32.mrb[22].mxu1 }
 0x8bc   : > { %v2374_v24 = vmul.f32 0.35355338, %v2369_v23  ;;  %v2293_v25 = vpop.f32.mrb[14].mxu0  ;;  %v4257_v26 = vpop.f32.mrb[23].mxu1 }
 0x8bd   : > { %v2373_v27 = vmul.f32 0.35355338, %v2293_v25  ;;  %v4252_v28 = vpop.f32.mrb[15].mxu0 }
 0x8be   : > { %v2376_v29 = vadd.f32 %v4956_v30, %v2374_v24 }
 0x8bf   : > { %v2375_v31 = vadd.f32 %v4961_v34, %v2373_v27 }
 0x8c0   : > { %v2380_v32 = vsel %vm915_vm3, %v2376_v29, -inf }
 0x8c1   : > { %2381 = vmax.xlane.f32.xlu1 %v2380_v32  ;;  %v2377_v33 = vsel %vm915_vm3, %v2375_v31, -inf }
 0x8c2   : > { %2378 = vmax.xlane.f32.xlu0 %v2377_v33 }
 0x94e   : > { %v2382_v35 = vpop.xlane.xlu1 %2381 }
 0x94f   : > { %v2384_v36 = vsub.f32 %v2376_v29, %v2382_v35  ;;  %v2379_v37 = vpop.xlane.xlu0 %2378 }
 0x950   : > { %v2383_v38 = vsub.f32 %v2375_v31, %v2379_v37 }
 0x951   : > { %v2387_v39 = vmul.f32 1.442695, %v2384_v36 }
 0x952   : > { %v2385_v40 = vmul.f32 1.442695, %v2383_v38 }
 0x953   : > { %4571 = vpow2.f32 %v2387_v39 }
 0x954   : > { %4573 = vpow2.f32 %v2385_v40 }
 0x95d   : > { %v4572_v41 = vpop.eup %4571 }
 0x95e   : > { %v4574_v42 = vpop.eup %4573  ;;  %v2392_v43 = vsel %vm915_vm3, %v4572_v41, 0.0 }
 0x95f   : > { %2393 = vadd.xlane.f32.xlu1 %v2392_v43  ;;  %v2389_v44 = vsel %vm915_vm3, %v4574_v42, 0.0 }
 0x960   : > { %2390 = vadd.xlane.f32.xlu0 %v2389_v44 }
 0x9ec   : > { %v2394_v46 = vpop.xlane.xlu1 %2393 }
 0x9ed   : > { %4575 = vrcp.f32 %v2394_v46  ;;  %v2391_v47 = vpop.xlane.xlu0 %2390 }
 0x9ee   : > { %4577 = vrcp.f32 %v2391_v47 }
 0x9f7   : > { %v4576_v48 = vpop.eup %4575 }
 0x9f8   : > { %v4578_v50 = vpop.eup %4577  ;;  %v5090_v52 = vmul.f32 %v4576_v48, %v4572_v41  ;;  %v3941_v48 = vld [vmem:[%s4871_s26 + $0x18] sm:$0xff] }
 0x9f9   : > { %v5092_v53 = vmul.f32 %v4578_v50, %v4574_v42 }
 0x9fa   : > { %4266 = vmatmul.mubr.msk.f32.vlgmr.msra.gmra.mrb[24].mxu1 %vm915_vm3, %v5090_v52 }
 0x9fb   : > { %4261 = vmatmul.mubr.msk.f32.vlgmr.msra.gmra.mrb[16].mxu0 %vm915_vm3, %v5092_v53  ;;  %4281 = vmatprep.mubr.msk.f32.mxu1 %vm675_vm1, %v4913_v7 }
 0x9fc   : > { %4269 = vmatpush3.msra.mxu0 %v3914_v45  ;;  %4436 = vmatpush3.bf16.msra.mxu1 %v4433_v59 }
 0x9fd   : > { %4442 = vmatprep.subr.bf16.mxu0 %v4441_v56  ;;  %4438 = vmatprep.subr.bf16.mxu1 %v4437_v63 }
 0xa00   : > { %4440 = vmatpush3.bf16.msra.mxu1 %v4437_v63 }
 0xa01   : > { %4450 = vmatprep.subr.bf16.mxu1 %v4449_v19 }
 0xa03   : > { %4282 = vmatmul.mubr.msk.f32.vlgmr.msra.gmra.mrb[26].mxu1 %vm675_vm1, %v4923_v14 }
 0xa04   : > { %4303 = vmatprep.mubr.msk.f32.mxu1 %vm675_vm1, %v4913_v7  ;;  %4452 = vmatpush3.bf16.msra.mxu1 %v4449_v19  ;;  %v3446_v19 = vld [vmem:[%s4898_s16] sm:$0xff] }
 0xa05   : > { %4454 = vmatprep.subr.bf16.mxu1 %v4453_v21 }
 0xa08   : > { %4456 = vmatpush3.bf16.msra.mxu1 %v4453_v21  ;;  %v3448_v21 = vld [vmem:[%s4898_s16 + $0x10] sm:$0xff] }
 0xa09   : > { %4316 = vmatprep.subr.mxu1 %v4705_v16 }
 0xa0b   : > { %4304 = vmatmul.mubr.msk.f32.vlgmr.msra.gmra.mrb[28].mxu1 %vm675_vm1, %v4923_v14 }
 0xa0c   : > { %4318 = vmatprep.mubr.msk.f32.mxu1 %vm4706_vm2, %v4705_v16 }
 0xacd   : > { %v2541_v2 = vpop.f32.mrb[24].mxu1 }
 0xace   : > { %v2468_v4 = vpop.f32.mrb[16].mxu0  ;;  %v4267_v6 = vpop.f32.mrb[25].mxu1 }
 0xacf   : > { %v4262_v10 = vpop.f32.mrb[17].mxu0  ;;  %4270 = vmatprep.mubr.msk.f32.mxu0 %vm915_vm3, %v2468_v4 }
 0xad0   : > { %4271 = vmatmul.mubr.msk.f32.vlgmr.msra.gmra.mrb[10].mxu0 %vm915_vm3, %v2541_v2 }
 0xad1   : > { %4444 = vmatpush3.bf16.msra.mxu0 %v4441_v56  ;;  %4292 = vmatprep.mubr.msk.f32.mxu0 %vm675_vm1, %v4913_v7 }
 0xad2   : > { %4446 = vmatprep.subr.bf16.mxu0 %v4445_v9 }
 0xad5   : > { %4448 = vmatpush3.bf16.msra.mxu0 %v4445_v9 }
 0xad6   : > { %4306 = vmatprep.subr.mxu0 %v4705_v16  ;;  %v4283_v11 = vpop.f32.mrb[26].mxu1 }
 0xad7   : > { %v2701_v12 = vpop.f32.mrb[27].mxu1 }
 0xad8   : > { %4293 = vmatmul.mubr.msk.f32.vlgmr.msra.gmra.mrb[18].mxu0 %vm675_vm1, %v4923_v14 }
 0xad9   : > { %4308 = vmatprep.mubr.msk.f32.mxu0 %vm4706_vm2, %v4705_v16 }
 0xbab   : > { %v4294_v13 = vpop.f32.mrb[18].mxu0 }
 0xbac   : > { %v2781_v15 = vpop.f32.mrb[19].mxu0 }
 0xbad   : > { %4307 = vmatpush3.xpose.msk.msra.mxu0 %vm915_vm3, %v2781_v15 }
 0xbae   : > { %4311 = vmatprep.subr.mxu0 %v4705_v16 }
 0xbb0   : > { %4309 = vmatmul.mubr.msk.f32.vlgmr.msra.gmra.mrb[20].mxu0 %vm915_vm3, %v2701_v12  ;;  %v3352_v12 = vld [vmem:[%s4884_s1] sm:$0xff] }
 0xbb1   : > { %4312 = vmatpush3.xpose.msk.msra.mxu0 %vm915_vm3, %v4294_v13  ;;  %4313 = vmatprep.mubr.msk.f32.mxu0 %vm4706_vm2, %v4705_v16  ;;  %v3353_v13 = vld [vmem:[%s4884_s1 + $0x8] sm:$0xff] }
 0xbb2   : > { %4321 = vmatprep.subr.mxu0 %v4705_v16  ;;  %v4457_v15 = vpack.c.bf16 %v3353_v13, %v3352_v12 }
 0xbb4   : > { %4314 = vmatmul.mubr.msk.f32.vlgmr.msra.gmra.mrb[22].mxu0 %vm915_vm3, %v4283_v11 }
 0xbb5   : > { %4323 = vmatprep.mubr.msk.f32.mxu0 %vm4706_vm2, %v4705_v16 }
 0xc83   : > { %v2942_v22 = vpop.f32.mrb[20].mxu0 }
 0xc84   : > { %v3022_v5 = vmul.f32 0.35355338, %v2942_v22  ;;  %v4310_v23 = vpop.f32.mrb[21].mxu0  ;;  %v4465_v22 = vpack.c.bf16 %v3447_v20, %v3446_v19 }
 0xc86   : > { %v3024_v24 = vadd.f32 %v4961_v34, %v3022_v5  ;;  %v3449_v5 = vld [vmem:[%s4898_s16 + $0x18] sm:$0xff] }
 0xc87   : > { %v3018_v25 = vpop.f32.mrb[22].mxu0  ;;  %v4469_v23 = vpack.c.bf16 %v3449_v5, %v3448_v21 }
 0xc88   : > { %v3023_v26 = vmul.f32 0.35355338, %v3018_v25  ;;  %v4315_v27 = vpop.f32.mrb[23].mxu0  ;;  %v3026_v28 = vsel %vm915_vm3, %v3024_v24, -inf  ;;  %v3451_v25 = vld [vmem:[%s4898_s16 + $0x28] sm:$0xff] }
 0xc89   : > { %3027 = vmax.xlane.f32.xlu0 %v3026_v28 }
 0xc8a   : > { %v3025_v29 = vadd.f32 %v4956_v30, %v3023_v26  ;;  %v4305_v30 = vpop.f32.mrb[28].mxu1 }
 0xc8b   : > { %v2861_v41 = vpop.f32.mrb[29].mxu1  ;;  %4322 = vmatpush3.msra.mxu0 %v4305_v30 }
 0xc8c   : > { %v3029_v31 = vsel %vm915_vm3, %v3025_v29, -inf  ;;  %4317 = vmatpush3.msra.mxu1 %v2861_v41  ;;  %4326 = vmatprep.subr.mxu0 %v3941_v48 }
 0xc8d   : > { %3030 = vmax.xlane.f32.xlu1 %v3029_v31  ;;  %4458 = vmatprep.subr.bf16.mxu1 %v4457_v15 }
 0xd16   : > { %v3028_v32 = vpop.xlane.xlu0 %3027 }
 0xd17   : > { %v3032_v33 = vsub.f32 %v3024_v24, %v3028_v32  ;;  %v3450_v24 = vld [vmem:[%s4898_s16 + $0x20] sm:$0xff] }
 0xd18   : > { %v4473_v26 = vpack.c.bf16 %v3451_v25, %v3450_v24 }
 0xd19   : > { %v3034_v35 = vmul.f32 1.442695, %v3032_v33 }
 0xd1a   : > { %v3031_v16 = vpop.xlane.xlu1 %3030 }
 0xd1b   : > { %4579 = vpow2.f32 %v3034_v35  ;;  %v3033_v36 = vsub.f32 %v3025_v29, %v3031_v16  ;;  %v5178_v16 = vld [vmem:[%s5375_s29] ss:$0 sm:$0xff] }
 0xd1d   : > { %v3036_v37 = vmul.f32 1.442695, %v3033_v36 }
 0xd1f   : > { %4581 = vpow2.f32 %v3036_v37 }
 0xd25   : > { %v4580_v34 = vpop.eup %4579 }
 0xd26   : > { %v3038_v38 = vsel %vm915_vm3, %v4580_v34, 0.0 }
 0xd27   : > { %3039 = vadd.xlane.f32.xlu0 %v3038_v38  ;;  %v5185_v38 = vld [vmem:[%s637_s27] ss:$0 sm:$0xff] }
 0xd29   : > { %v4582_v39 = vpop.eup %4581 }
 0xd2a   : > { %v3041_v40 = vsel %vm915_vm3, %v4582_v39, 0.0 }
 0xd2b   : > { %3042 = vadd.xlane.f32.xlu1 %v3041_v40 }
 0xdb4   : > { %v3040_v42 = vpop.xlane.xlu0 %3039 }
 0xdb5   : > { %4583 = vrcp.f32 %v3040_v42  ;;  %v3452_v42 = vld [vmem:[%s4898_s16 + $0x30] sm:$0xff] }
 0xdb8   : > { %v3043_v43 = vpop.xlane.xlu1 %3042 }
 0xdb9   : > { %4585 = vrcp.f32 %v3043_v43  ;;  %v3453_v43 = vld [vmem:[%s4898_s16 + $0x38] sm:$0xff]  ;;  %s4709_s16 = smov 24  }
 0xdbf   : > { %v4584_v44 = vpop.eup %4583 }
 0xdc0   : > { %v5146_v45 = vmul.f32 %v4584_v44, %v4580_v34  ;;  %v4477_v44 = vpack.c.bf16 %v3453_v43, %v3452_v42 }
 0xdc2   : > { %4319 = vmatmul.mubr.msk.f32.vlgmr.msra.gmra.mrb[30].mxu1 %vm915_vm3, %v5146_v45 }
 0xdc3   : > { %v4586_v46 = vpop.eup %4585  ;;  %4460 = vmatpush3.bf16.msra.mxu1 %v4457_v15 }
 0xdc4   : > { %v5150_v47 = vmul.f32 %v4586_v46, %v4582_v39  ;;  %4462 = vmatprep.subr.bf16.mxu1 %v4461_v8  ;;  %v3946_v46 = vld [vmem:[%s645_s15] ss:$0 sm:$0xff] }
 0xdc6   : > { %4324 = vmatmul.mubr.msk.f32.vlgmr.msra.gmra.mrb[24].mxu0 %vm915_vm3, %v5150_v47 }
 0xdc7   : > { %4327 = vmatpush3.msra.mxu0 %v3941_v48  ;;  %4464 = vmatpush3.bf16.msra.mxu1 %v4461_v8 }
 0xdc8   : > { %4466 = vmatprep.subr.bf16.mxu0 %v4465_v22 }
 0xe95   : > { %v3117_v50 = vpop.f32.mrb[30].mxu1 }
 0xe96   : > { %v4320_v54 = vpop.f32.mrb[31].mxu1  ;;  %4328 = vmatprep.mubr.msk.f32.mxu0 %vm915_vm3, %v3117_v50 }
 0xe99   : > { %v3190_v55 = vpop.f32.mrb[24].mxu0 }
 0xe9a   : > { %v4325_v56 = vpop.f32.mrb[25].mxu0  ;;  %4329 = vmatmul.mubr.msk.f32.vlgmr.msra.gmra.mrb[10].mxu0 %vm915_vm3, %v3190_v55 }
 0xe9b   : > { %4468 = vmatpush3.bf16.msra.mxu0 %v4465_v22 }
 0xe9c   : > { %4470 = vmatprep.subr.bf16.mxu0 %v4469_v23 }
 0xe9f   : > { %4472 = vmatpush3.bf16.msra.mxu0 %v4469_v23 }
 0xea0   : > { %4474 = vmatprep.subr.bf16.mxu0 %v4473_v26 }
 0xea3   : > { %4476 = vmatpush3.bf16.msra.mxu0 %v4473_v26 }
 0xea4   : > { %4478 = vmatprep.subr.bf16.mxu0 %v4477_v44 }
 0xea7   : > { %4480 = vmatpush3.bf16.msra.mxu0 %v4477_v44 }
 0xf6d   : > { %v4330_v57 = vpop.f32.mrb[10].mxu0 }
 0xf6e   : > { %v3308_v58 = vadd.f32 %v4330_v57, %v4923_v14  ;;  %v3268_v59 = vpop.f32.mrb[11].mxu0 }
 0xf6f   : > { %v3307_v60 = vadd.f32 %v3268_v59, %v4913_v7 }
 0xf70   : > { %v3312_v61 = vsel %vm675_vm1, %v3308_v58, 0.0 }
 0xf71   : > { %3313 = vadd.xlane.f32.xlu1 %v3312_v61  ;;  %v3309_v63 = vsel %vm675_vm1, %v3307_v60, 0.0 }
 0xf72   : > { %3310 = vadd.xlane.f32.xlu0 %v3309_v63 }
 0xffe   : > { %v3314_v0 = vpop.xlane.xlu1 %3313 }
 0xfff   : > { %v3317_v1 = vmul.f32 0.03125, %v3314_v0  ;;  %v3311_v2 = vpop.xlane.xlu0 %3310 }
0x1000   : > { %v3316_v4 = vmul.f32 0.03125, %v3311_v2 }
0x1001   : > { %v3319_v6 = vsub.f32 %v3308_v58, %v3317_v1  ;;  %v3949_v58 = vld [vmem:[%s653_s5] ss:$0 sm:$0xff]  ;;  %s4707_s5 = smov 8  }
0x1002   : > { %v3318_v9 = vsub.f32 %v3307_v60, %v3316_v4 }
0x1003   : > { %v3321_v14 = vmul.f32 %v3319_v6, %v3319_v6 }
0x1004   : > { %v3320_v10 = vmul.f32 %v3318_v9, %v3318_v9 }
0x1005   : > { %v3325_v7 = vsel %vm675_vm1, %v3321_v14, 0.0 }
0x1006   : > { %3326 = vadd.xlane.f32.xlu1 %v3325_v7  ;;  %v3322_v11 = vsel %vm675_vm1, %v3320_v10, 0.0 }
0x1007   : > { %3323 = vadd.xlane.f32.xlu0 %v3322_v11 }
0x1093   : > { %v3327_v27 = vpop.xlane.xlu1 %3326 }
0x1094   : > { %v3329_v28 = vmul.f32 0.03125, %v3327_v27  ;;  %v3324_v29 = vpop.xlane.xlu0 %3323 }
0x1095   : > { %v3328_v31 = vmul.f32 0.03125, %v3324_v29 }
0x1096   : > { %v3331_v32 = vadd.f32 1e-05, %v3329_v28 }
0x1097   : > { %v3330_v33 = vadd.f32 1e-05, %v3328_v31 }
0x1098   : > { %4587 = vrsqrt.f32 %v3331_v32 }
0x1099   : > { %4589 = vrsqrt.f32 %v3330_v33 }
0x10a2   : > { %v4588_v35 = vpop.eup %4587 }
0x10a3   : > { %v4590_v36 = vpop.eup %4589  ;;  %v3335_v37 = vmul.f32 %v4588_v35, %v3319_v6 }
0x10a4   : > { %v3334_v34 = vmul.f32 %v4590_v36, %v3318_v9 }
0x10a5   : > { %v3343_v39 = vmul.f32 %v5178_v16, %v3335_v37 }
0x10a6   : > { %v3342_v40 = vmul.f32 %v5178_v16, %v3334_v34 }
0x10a7   : > { %v3351_v41 = vadd.f32 %v5185_v38, %v3343_v39 }
0x10a8   : > { %v3350_v30 = vadd.f32 %v5185_v38, %v3342_v40 }
0x10aa   : > { %4339 = vmatprep.mubr.msk.f32.mxu1 %vm675_vm1, %v3350_v30 }
0x10ab   : > { %4340 = vmatmul.mubr.msk.f32.vlgmr.msra.gmra.mrb[32].mxu1 %vm675_vm1, %v3351_v41 }
0x117e   : > { %v4341_v48 = vpop.f32.mrb[32].mxu1 }
0x117f   : > { %v3441_v50 = vadd.f32 %v4341_v48, %v3946_v46  ;;  %v3435_v54 = vpop.f32.mrb[33].mxu1 }
0x1180   : > { %v3436_v55 = vadd.f32 %v3946_v46, %v3435_v54 }
0x1181   : > { %v3445_v57 = vmax.f32 %v3441_v50, 0.0 }
0x1182   : > { %v3444_v56 = vmax.f32 %v3436_v55, 0.0 }
0x1184   : > { %4358 = vmatprep.mubr.msk.f32.mxu0 %vm3461_vm4, %v3444_v56 }
0x1185   : > { %4359 = vmatmul.mubr.msk.f32.vlgmr.msra.gmra.mrb[26].mxu0 %vm3461_vm4, %v3445_v57 }
0x1258   : > { %v4360_v59 = vpop.f32.mrb[26].mxu0 }
0x1259   : > { %v3540_v60 = vadd.f32 %v4360_v59, %v3949_v58  ;;  %v3534_v61 = vpop.f32.mrb[27].mxu0 }
0x125a   : > { %v3535_v63 = vadd.f32 %v3949_v58, %v3534_v61 }
0x125b   : > { %v3544_v0 = vadd.f32 %v3540_v60, %v3351_v41 }
0x125c   : > { %v3543_v1 = vadd.f32 %v3535_v63, %v3350_v30 }
0x125d   : > { %v3548_v2 = vsel %vm675_vm1, %v3544_v0, 0.0 }
0x125e   : > { %3549 = vadd.xlane.f32.xlu1 %v3548_v2  ;;  %v3545_v4 = vsel %vm675_vm1, %v3543_v1, 0.0 }
0x125f   : > { %3546 = vadd.xlane.f32.xlu0 %v3545_v4 }
0x12eb   : > { %v3550_v6 = vpop.xlane.xlu1 %3549 }
0x12ec   : > { %v3552_v9 = vmul.f32 0.03125, %v3550_v6  ;;  %v3547_v14 = vpop.xlane.xlu0 %3546 }
0x12ed   : > { %v3551_v10 = vmul.f32 0.03125, %v3547_v14 }
0x12ee   : > { %v3554_v7 = vsub.f32 %v3544_v0, %v3552_v9 }
0x12ef   : > { %v3553_v11 = vsub.f32 %v3543_v1, %v3551_v10 }
0x12f0   : > { %v3556_v12 = vmul.f32 %v3554_v7, %v3554_v7 }
0x12f1   : > { %v3555_v13 = vmul.f32 %v3553_v11, %v3553_v11 }
0x12f2   : > { %v3560_v15 = vsel %vm675_vm1, %v3556_v12, 0.0 }
0x12f3   : > { %3561 = vadd.xlane.f32.xlu1 %v3560_v15  ;;  %v3557_v17 = vsel %vm675_vm1, %v3555_v13, 0.0 }
0x12f4   : > { %3558 = vadd.xlane.f32.xlu0 %v3557_v17 }
0x1304   : > { %3281 = vrot.lane.b32.xlu1 %v5031_v51, %s4707_s5 }
0x1308   : > { %3285 = vrot.lane.b32.xlu1 %v5092_v53, %s4708_s14 }
0x130a   : > { %3279 = vrot.lane.b32.xlu0 %v5027_v49, %s4707_s5 }
0x130c   : > { %3287 = vrot.lane.b32.xlu1 %v5090_v52, %s4708_s14 }
0x130e   : > { %3291 = vrot.lane.b32.xlu0 %v5146_v45, %s4709_s16 }
0x1310   : > { %3293 = vrot.lane.b32.xlu1 %v5150_v47, %s4709_s16 }
0x1380   : > { %v3562_v18 = vpop.xlane.xlu1 %3561 }
0x1381   : > { %v3564_v8 = vmul.f32 0.03125, %v3562_v18  ;;  %v3559_v19 = vpop.xlane.xlu0 %3558 }
0x1382   : > { %v3563_v20 = vmul.f32 0.03125, %v3559_v19 }
0x1383   : > { %v3566_v21 = vadd.f32 1e-05, %v3564_v8 }
0x1384   : > { %v3565_v51 = vadd.f32 1e-05, %v3563_v20  ;;  %v3282_v22 = vpop.permute.xlu1 %3281 }
0x1385   : > { %4591 = vrsqrt.f32 %v3566_v21  ;;  %v3280_v53 = vpop.permute.xlu0 %3279  ;;  %v3298_v25 = vsel %vm915_vm3, %v4975_v62, %v3282_v22 }
0x1386   : > { %4593 = vrsqrt.f32 %v3565_v51  ;;  %v3297_v49 = vsel %vm915_vm3, %v4983_v3, %v3280_v53 }
0x1388   : > { %v3286_v52 = vpop.permute.xlu1 %3285 }
0x1389   : > { %v3300_v45 = vsel %vm3299_vm5, %v3297_v49, %v3286_v52  ;;  %v3292_v47 = vpop.permute.xlu0 %3291 }
0x138a   : > { %v3303_v5 = vsel %vm3302_vm6, %v3300_v45, %v3292_v47 }
0x138b   : > { %3305 = vst.msk [vmem:[%s4900_s2] sm:$0xff] %vm675_vm1, %v3303_v5 }
0x138c   : > { %v3288_v23 = vpop.permute.xlu1 %3287 }
0x138d   : > { %v3301_v28 = vsel %vm3299_vm5, %v3298_v25, %v3288_v23 }
0x138f   : > { %v4592_v24 = vpop.eup %4591 }
0x1390   : > { %v4594_v26 = vpop.eup %4593  ;;  %v3570_v27 = vmul.f32 %v4592_v24, %v3554_v7  ;;  %v3294_v29 = vpop.permute.xlu1 %3293 }
0x1391   : > { %v3569_v31 = vmul.f32 %v4594_v26, %v3553_v11  ;;  %v3304_v32 = vsel %vm3302_vm6, %v3301_v28, %v3294_v29  ;;  %3580 = sbr.rel (%p3952_p13) target bundleno = 5016 (0x1398), region = 76 }
0x1392   : > { %v3572_v3 = vmul.f32 %v5178_v16, %v3570_v27  ;;  %3306 = vst.msk [vmem:[%s4900_s2 + $0x8] sm:$0xff] %vm675_vm1, %v3304_v32 }
0x1393   : > { %v3571_v33 = vmul.f32 %v5178_v16, %v3569_v31 }
0x1394   : > { %v3574_v35 = vadd.f32 %v5185_v38, %v3572_v3 }
0x1395   : > { %v3573_v36 = vadd.f32 %v5185_v38, %v3571_v33 }
0x1396   : > { %3576 = vst.msk [vmem:[#allocation2 + $0x8] sm:$0xff] %vm675_vm1, %v3574_v35  ;;  %3582 = vst.msk [vmem:[#allocation3 + $0x8] sm:$0xff] (!%p3952_p13), %vm675_vm1, %v3574_v35 }
0x1397   : > { %3575 = vst.msk [vmem:[#allocation2] sm:$0xff] %vm675_vm1, %v3573_v36  ;;  %3581 = vst.msk [vmem:[#allocation3] sm:$0xff] (!%p3952_p13), %vm675_vm1, %v3573_v36 }
0x1398 PF: > { %s4710_s15 = smov [#allocation3]  }
0x1399   : > { %s3597_s20 = sshll.u32 %s4710_s15, 4  ;;  %s3598_s20 = int_to_ptr.vmem [resolvable:$true] %s3597_s20 }
0x139a   : > { %s4595_s22 = scalar_lea.vmem %s3598_s20, 256  ;;  %p4602_p5 = scmp.lt.s32.totalorder %s3598_s20, %s3598_s20 }
0x139b   : > { %p4596_p0 = scmp.ne.s32.totalorder %s3598_s20, %s4595_s22  ;;  %p4603_p6 = scmp.lt.s32.totalorder %s4595_s22, %s4595_s22 }
0x139d   : > { %p4597_p1 = pnand %p4596_p0, %p4819_p2  ;;  %p4604_p7 = por %p4603_p6, %p4602_p5 }
0x139f   : > { %p4598_p3 = pneg %p4597_p1 }
0x13a1   : > { %p4605_p9 = pnand %p4604_p7, %p4598_p3 }
0x13a3   : > { %4608 = shalt.err (!%p4605_p9)
}
0x13a4   : > { %s5377_s25 = sld [smem:[#allocation24_spill]] }
0x13aa   : > { %s5378_s13 = smov %s5377_s25  ;;  %s4609_s19 = scalar_lea.hbm %s5377_s25, 256 }
0x13ab   : > { %p4610_p10 = scmp.ne.s32.totalorder %s5378_s13, %s4609_s19  ;;  %p4615_p13 = scmp.lt.u32.totalorder %s4609_s19, %s5378_s13 }
0x13ad   : > { %p4611_p11 = pnand %p4610_p10, %p4819_p2 }
0x13af   : > { %p4612_p12 = pneg %p4611_p11 }
0x13b1   : > { %p4617_p0 = pnand %p4615_p13, %p4612_p12 }
0x13b3   : > { %4620 = shalt.err (!%p4617_p0)
}
0x13b4   : > { %s4711_s23 = smov 128   ;;  %s5379_s18 = sld [smem:[#allocation10_spill]] }
0x13b5   : > { %4488 = dma.vmem_to_hbm [thread:$0]  (%p4819_p2), %s3598_s20, 256, %s5378_s13, [#allocation4], %s4711_s23, %s4711_s23, %s4707_s5  }
0x13b6   : > { %s3966_s14 = sshll.u32 %s4695_s28, 8  ;;  %s3615_s16 = sshll.u32 %s4900_s2, 4  ;;  %s5262_s16 = int_to_ptr.vmem [resolvable:$true] %s3615_s16 }
0x13b7   : > { %s5381_s4 = sld [smem:[#allocation25_spill]]  ;;  %s4621_s1 = scalar_lea.vmem %s5262_s16, 256 }
0x13b8   : > { %p4622_p1 = scmp.ne.s32.totalorder %s5262_s16, %s4621_s1  ;;  %s4712_s28 = smov [#allocation5]  }
0x13b9   : > { %s4625_s2 = sshll.u32 %s4712_s28, 4  ;;  %s4626_s2 = int_to_ptr.vmem [resolvable:$false] %s4625_s2 }
0x13ba   : > { %s5382_s25 = sand.u32 1, %s5379_s18   ;;  %p4623_p3 = pnand %p4622_p1, %p4829_p4 }
0x13bb   : > { %s5266_s19 = scalar_lea.sflag [#allocation6], %s5382_s25  ;;  %s4627_s20 = scalar_lea.vmem %s4626_s2, 512 }
0x13bc   : > { %p4624_p5 = pneg %p4623_p3  ;;  %p4628_p6 = scmp.lt.s32.totalorder %s5262_s16, %s4626_s2 }
0x13bd   : > { %s5260_s24 = scalar_lea.hbm %s5381_s4, %s3966_s14  ;;  %p4629_p7 = scmp.lt.s32.totalorder %s4627_s20, %s4621_s1 }
0x13bf   : > { %p4630_p9 = por %p4629_p7, %p4628_p6 }
0x13c1   : > { %p4631_p10 = pnand %p4630_p9, %p4624_p5 }
0x13c3   : > { %4634 = shalt.err (!%p4631_p10)
}
0x13c4   : > { %s4635_s26 = scalar_lea.hbm %s5260_s24, 256  ;;  %s4639_s27 = scalar_lea.hbm %s5381_s4, 512 }
0x13c5   : > { %p4636_p11 = scmp.ne.s32.totalorder %s5260_s24, %s4635_s26  ;;  %p4640_p0 = scmp.lt.u32.totalorder %s5260_s24, %s5381_s4 }
0x13c6   : > { %p4641_p1 = scmp.lt.u32.totalorder %s4639_s27, %s4635_s26  ;;  %p4643_p5 = scmp.lt.u32.totalorder %s4635_s26, %s5260_s24 }
0x13c7   : > { %p4637_p12 = pnand %p4636_p11, %p4829_p4 }
0x13c8   : > { %p4642_p3 = por %p4641_p1, %p4640_p0 }
0x13c9   : > { %p4638_p13 = pneg %p4637_p12 }
0x13ca   : > { %p4644_p6 = por %p4643_p5, %p4642_p3 }
0x13cc   : > { %p4645_p7 = pnand %p4644_p6, %p4638_p13 }
0x13ce   : > { %4648 = shalt.err (!%p4645_p7)
}
0x13cf   : > { %4489 = dma.vmem_to_hbm [thread:$0]  (%p4829_p4), %s5262_s16, 256, %s5260_s24, %s5266_s19, %s4711_s23, %s4711_s23, %s4707_s5  }
0x13d0   : > { %4674 = dma.done.wait (%p4819_p2), [#allocation4], 256  }
0x13d1   : > { %4676 = vsyncadd (%p4819_p2), [#allocation4], 4294967040 }
0x13d2 PF: > { %s5383_s14 = sld [smem:[#allocation13_spill]]  ;;  %s5384_s15 = sld [smem:[#allocation9_spill]] }
0x13d8   : > { %p4499_p9 = scmp.ge.s32.totalorder %s5383_s14, 2  ;;  %s3634_s25 = sand.u32 1, %s5384_s15  }
0x13d9   : > { %s3635_s3 = scalar_lea.sflag [#allocation6], %s3634_s25 }
0x13da   : > { %p4494_p10 = pnand %p4499_p9, %p4836_p8 }
0x13dc   : > { %4678 = dma.done.wait (!%p4494_p10), %s3635_s3, 256  }
0x13dd   : > { %4680 = vsyncadd (!%p4494_p10), %s3635_s3, 4294967040  ;;  %s28_s30 = sadd.s32 1, %s5383_s14   ;;  %s5386_s25 = sld [smem:[#allocation10_spill]] }
0x13de   : > { %p25_p11 = scmp.ge.s32.totalorder %s28_s30, 4   ;;  %s5387_s26 = sld [smem:[#allocation11_spill]] }
0x13df   : > { %s5388_s27 = sld [smem:[#allocation18_spill]]  ;;  %s5389_s28 = sld [smem:[#allocation12_spill]] }
0x13e0   : > { %s5390_s29 = sld [smem:[#allocation15_spill]]  ;;  %27 = sbr.rel (!%p25_p11) target bundleno = 13 (0xd), region = 166 }
0x13e7   :  { %3640 = vsyncpa [#allocation4], 1 }
0x13e8   :  { %3642 = vsyncpa [#allocation4 + $0x1], 1 }
0x13e9   :  { %3643 = vsyncpa [#allocation6], 1 }
0x13ea   :  { %3645 = vsyncpa [#allocation6 + $0x1], 1 }

</bundles_post_ra>
